<compile_context>
chip_gen: v7x
topology: tpu7x:2x2x1
jax: 0.10.0
libtpu: 0.0.40
codegen_flags: <defaults>
</compile_context>

<pallas_src>
import jax
import jax.numpy as jnp
from jax.experimental import pallas as pl
from jax.experimental.pallas import tpu as pltpu

BN_EPS = 1e-5
VMEM_LIMIT_BYTES = 32 * 1024 * 1024   # safe on v5e/v6e (128 MiB) and v7x (64 MiB/core)
TARGET_ROWS = 256                     # rows per pass-1 step: keeps the live f32 acc ~32 vregs
X_BLOCK_BYTES = 8 * 1024 * 1024       # per-buffer budget for the resident input block


def _largest_divisor(extent, cap):
    """Largest divisor of `extent` that is <= cap (>= 1 always exists)."""
    cap = max(1, min(extent, cap))
    for d in range(cap, 0, -1):
        if extent % d == 0:
            return d
    return 1


def _row_tile(extent, cap):
    """Largest divisor of `extent` <= cap that is a multiple of 8 (sublane
    quantum), falling back to the full extent (always a legal block)."""
    cap = max(1, min(extent, cap))
    for d in range(cap, 0, -1):
        if extent % d == 0 and d % 8 == 0:
            return d
    return extent


def conv_bn_relu_2d(x_nchw, weight, gamma, beta, padding):
    """x_nchw: (N, C_in, H, W); weight: (C_out, C_in, kh, kw) [PyTorch layout]."""
    n, c_in, h, w = x_nchw.shape
    c_out, c_in_w, kh, kw = weight.shape
    assert c_in == c_in_w, (c_in, c_in_w)

    hp, wp = h + 2 * padding, w + 2 * padding
    ho, wo = hp - kh + 1, wp - kw + 1
    m = n * ho * wo
    k_dim = kh * kw * c_in                      # folded contraction depth

    # --- host-side layout plumbing (bf16 before pad; no im2col materialization) ---
    x_nhwc = jnp.transpose(x_nchw, (0, 2, 3, 1)).astype(jnp.bfloat16)
    x_pad = jnp.pad(x_nhwc, ((0, 0), (padding, padding), (padding, padding), (0, 0)))

    # (C_out, C_in, kh, kw) -> (kh, kw, C_in, C_out) -> (kh*kw*C_in, C_out)
    w2d = jnp.transpose(weight, (2, 3, 1, 0)).reshape(k_dim, c_out).astype(jnp.bfloat16)

    # ---- pass-1 tiling: th output rows x tn batches per step ----
    th = _largest_divisor(ho, max(1, TARGET_ROWS // max(wo, 1)))
    tn_cap_rows = max(1, TARGET_ROWS // max(1, th * wo))
    tn_cap_vmem = max(1, X_BLOCK_BYTES // max(1, hp * wp * c_in * 2))
    tn = _largest_divisor(n, min(tn_cap_rows, tn_cap_vmem))
    nb, hb = n // tn, ho // th
    rows = tn * th * wo                          # output rows produced per step

    # =========================================================================
    # Pass 1: direct conv (single folded-K matmul per tile) + per-batch-block
    #         partial BN statistics accumulated into a resident output ref.
    # Grid = (batch blocks [parallel], H blocks [arbitrary]).
    # =========================================================================
    def conv_stats_kernel(x_ref, w_ref, conv_ref, stats_ref):
        j = pl.program_id(1)

        @pl.when(j == 0)
        def _init():
            stats_ref[...] = jnp.zeros_like(stats_ref)

        # Window of th+kh-1 padded input rows for this output-row block.
        h0 = pl.multiple_of(j * th, th)
        win = x_ref[:, pl.ds(h0, th + kh - 1), :, :]          # (tn, th+kh-1, wp, c_in)

        # Fold kh*kw taps into the contraction dim: (rows, kh*kw*c_in) LHS.
        taps = []
        for di in range(kh):
            rows_di = win[:, di:di + th, :, :]                # (tn, th, wp, c_in)
            for dj in range(kw):
                taps.append(rows_di[:, :, dj:dj + wo, :])     # (tn, th, wo, c_in)
        lhs = jnp.concatenate(taps, axis=-1).reshape(rows, k_dim)

        # One MXU matmul, f32 accumulation.
        acc = jnp.dot(lhs, w_ref[...], preferred_element_type=jnp.float32)  # (rows, c_out)

        conv_ref[...] = acc.reshape(tn, th, wo, c_out)

        # Partial sums for this batch block (resident across the H axis).
        stats_ref[0:1, :] += jnp.sum(acc, axis=0, keepdims=True)
        stats_ref[1:2, :] += jnp.sum(acc * acc, axis=0, keepdims=True)

    conv_nhwc, partial_stats = pl.pallas_call(
        conv_stats_kernel,
        out_shape=(jax.ShapeDtypeStruct((n, ho, wo, c_out), jnp.float32),
                   jax.ShapeDtypeStruct((nb, 2, c_out), jnp.float32)),
        grid=(nb, hb),
        in_specs=[
            # Whole padded input of the batch block; constant along H axis -> DMA'd
            # once per batch block (no halo re-reads).
            pl.BlockSpec((tn, hp, wp, c_in), lambda i, j: (i, 0, 0, 0)),
            pl.BlockSpec((k_dim, c_out), lambda i, j: (0, 0)),
        ],
        out_specs=(
            pl.BlockSpec((tn, th, wo, c_out), lambda i, j: (i, j, 0, 0)),
            pl.BlockSpec((None, 2, c_out), lambda i, j: (i, 0, 0)),
        ),
        compiler_params=pltpu.CompilerParams(
            dimension_semantics=("parallel", "arbitrary"),
            vmem_limit_bytes=VMEM_LIMIT_BYTES),
        cost_estimate=pl.CostEstimate(
            flops=2 * m * k_dim * c_out,
            transcendentals=0,
            bytes_accessed=int(x_pad.size) * 2 + int(w2d.size) * 2
                           + m * c_out * 4 + nb * 2 * c_out * 4),
    )(x_pad, w2d)

    # ---- reduce per-block partials & fold the BN affine (tiny, done in JAX) ----
    # NOTE: E[x^2]-E[x]^2 with f32 per-block partials reduced hierarchically;
    # adequate for this module's scale (values O(1), modest M).
    sums = jnp.sum(partial_stats[:, 0, :], axis=0)
    sqs = jnp.sum(partial_stats[:, 1, :], axis=0)
    mean = sums / m
    var = jnp.maximum(sqs / m - mean * mean, 0.0)
    inv_std = jax.lax.rsqrt(var + BN_EPS)
    scale = gamma.astype(jnp.float32) * inv_std
    shift = beta.astype(jnp.float32) - mean * scale

    # =========================================================================
    # Pass 2: folded BN FMA + ReLU on a lane-packed (n*ho, wo*c_out) view.
    # For this config wo*c_out = 128 exactly -> full-width, zero-padding stores.
    # =========================================================================
    r_total = n * ho
    lane_w = wo * c_out
    conv_packed = conv_nhwc.reshape(r_total, lane_w)          # free reshape (contiguous)
    scale_row = jnp.tile(scale, (wo,)).reshape(1, lane_w)     # per-lane scale (c fastest)
    shift_row = jnp.tile(shift, (wo,)).reshape(1, lane_w)

    row_cap = max(8, (4 * 1024 * 1024) // max(1, lane_w * 4))
    tr = _row_tile(r_total, min(row_cap, 4096))

    def bn_relu_kernel(conv_ref, scale_ref, shift_ref, o_ref):
        o_ref[...] = jnp.maximum(conv_ref[...] * scale_ref[...] + shift_ref[...], 0.0)

    out_packed = pl.pallas_call(
        bn_relu_kernel,
        out_shape=jax.ShapeDtypeStruct((r_total, lane_w), jnp.float32),
        grid=(r_total // tr,),
        in_specs=[pl.BlockSpec((tr, lane_w), lambda i: (i, 0)),
                  pl.BlockSpec((1, lane_w), lambda i: (0, 0)),
                  pl.BlockSpec((1, lane_w), lambda i: (0, 0))],
        out_specs=pl.BlockSpec((tr, lane_w), lambda i: (i, 0)),
        compiler_params=pltpu.CompilerParams(
            dimension_semantics=("parallel",),
            vmem_limit_bytes=VMEM_LIMIT_BYTES),
        cost_estimate=pl.CostEstimate(
            flops=3 * m * c_out,
            transcendentals=0,
            bytes_accessed=2 * m * c_out * 4 + 2 * lane_w * 4),
    )(conv_packed, scale_row, shift_row)

    # (n*ho, wo*c_out) -> (N, Ho, Wo, C_out) -> NCHW.
    out_nhwc = out_packed.reshape(n, ho, wo, c_out)
    return jnp.transpose(out_nhwc, (0, 3, 1, 2))


def _reference(x_nchw, weight, gamma, beta, padding):
    """Pure-JAX reference (conv with bf16 inputs / f32 accumulation, matching the
    kernel's MXU precision, then training-mode BN + ReLU in f32)."""
    conv = jax.lax.conv_general_dilated(
        x_nchw.astype(jnp.bfloat16), weight.astype(jnp.bfloat16),
        window_strides=(1, 1), padding=[(padding, padding), (padding, padding)],
        dimension_numbers=("NCHW", "OIHW", "NCHW"),
        preferred_element_type=jnp.float32)
    mean = jnp.mean(conv, axis=(0, 2, 3), keepdims=True)
    var = jnp.mean((conv - mean) ** 2, axis=(0, 2, 3), keepdims=True)
    normed = (conv - mean) * jax.lax.rsqrt(var + BN_EPS)
    out = normed * gamma.reshape(1, -1, 1, 1) + beta.reshape(1, -1, 1, 1)
    return jnp.maximum(out, 0.0)


if __name__ == "__main__":
    # Module config: Conv_BN_ReLU_2d(in_planes=4, out_planes=8, kernel_size=3, padding=1)
    in_planes, out_planes, ksize, padding = 4, 8, 3, 1
    N, H, W = 2, 16, 16

    key = jax.random.PRNGKey(0)
    kx, kw_, kg, kb = jax.random.split(key, 4)

    x = jax.random.normal(kx, (N, in_planes, H, W), dtype=jnp.float32)
    weight = 0.1 * jax.random.normal(kw_, (out_planes, in_planes, ksize, ksize),
                                     dtype=jnp.float32)
    gamma = 1.0 + 0.1 * jax.random.normal(kg, (out_planes,), dtype=jnp.float32)
    beta = 0.1 * jax.random.normal(kb, (out_planes,), dtype=jnp.float32)

    out = conv_bn_relu_2d(x, weight, gamma, beta, padding)
    out = jax.block_until_ready(out)

    ref = _reference(x, weight, gamma, beta, padding)
    assert out.shape == (N, out_planes, H, W), out.shape
    max_err = float(jnp.max(jnp.abs(out - ref)))
    assert max_err < 5e-3, max_err

    print("KERNEL_OK")
</pallas_src>

<mosaic_0001>
module attributes {stable_mosaic.version = 11 : i64} {
  func.func @conv_stats_kernel(%arg0: i32, %arg1: i32, %arg2: memref<1x18x18x4xbf16, #tpu.memory_space<vmem>>, %arg3: memref<36x8xbf16, #tpu.memory_space<vmem>>, %arg4: memref<1x16x16x8xf32, #tpu.memory_space<vmem>>, %arg5: memref<1x2x8xf32, #tpu.memory_space<vmem>>) attributes {dimension_semantics = [#tpu.dimension_semantics<parallel>, #tpu.dimension_semantics<arbitrary>], iteration_bounds = array<i64: 2, 1>, scalar_prefetch = 0 : i64, scratch_operands = 0 : i64, tpu.core_type = #tpu.core_type<tc>, window_params = [{transform_indices = @transform_0, window_bounds = array<i64: 1, 18, 18, 4>}, {pipeline_mode = #tpu.pipeline_mode<synchronous>, transform_indices = @transform_1, window_bounds = array<i64: 36, 8>}, {transform_indices = @transform_2, window_bounds = array<i64: 1, 16, 16, 8>}, {transform_indices = @transform_3, window_bounds = array<i64: 1, 2, 8>}]} {
    %c0_i32 = arith.constant 0 : i32
    %0 = arith.cmpi eq, %arg1, %c0_i32 : i32
    %1 = arith.extui %0 : i1 to i32
    %c0_i32_0 = arith.constant 0 : i32
    %2 = arith.cmpi ne, %1, %c0_i32_0 : i32
    scf.if %2 {
      %cst_22 = arith.constant 0.000000e+00 : f32
      %42 = vector.broadcast %cst_22 : f32 to vector<2x8xf32>
      %c0_23 = arith.constant 0 : index
      %c0_24 = arith.constant 0 : index
      %c0_25 = arith.constant 0 : index
      %43 = vector.load %arg5[%c0_23, %c0_24, %c0_25] : memref<1x2x8xf32, #tpu.memory_space<vmem>>, vector<1x2x8xf32>
      %44 = vector.shape_cast %43 : vector<1x2x8xf32> to vector<2x8xf32>
      %45 = vector.shape_cast %42 : vector<2x8xf32> to vector<1x2x8xf32>
      tpu.vector_store %arg5[%c0_23, %c0_24, %c0_25], %45 {strides = array<i32>} : memref<1x2x8xf32, #tpu.memory_space<vmem>>, vector<1x2x8xf32>,
    } else {
    }
    %c16_i32 = arith.constant 16 : i32
    %3 = arith.muli %arg1, %c16_i32 : i32
    %4 = tpu.assume_multiple %3, 16 : i32
    %c0 = arith.constant 0 : index
    %5 = arith.index_cast %4 : i32 to index
    %c0_1 = arith.constant 0 : index
    %c0_2 = arith.constant 0 : index
    %6 = vector.load %arg2[%c0, %5, %c0_1, %c0_2] : memref<1x18x18x4xbf16, #tpu.memory_space<vmem>>, vector<1x18x18x4xbf16>
    %7 = vector.extract_strided_slice %6 {offsets = [0, 0, 0, 0], sizes = [1, 16, 18, 4], strides = [1, 1, 1, 1]} : vector<1x18x18x4xbf16> to vector<1x16x18x4xbf16>
    %8 = vector.extract_strided_slice %7 {offsets = [0, 0, 0, 0], sizes = [1, 16, 16, 4], strides = [1, 1, 1, 1]} : vector<1x16x18x4xbf16> to vector<1x16x16x4xbf16>
    %9 = vector.extract_strided_slice %7 {offsets = [0, 0, 1, 0], sizes = [1, 16, 16, 4], strides = [1, 1, 1, 1]} : vector<1x16x18x4xbf16> to vector<1x16x16x4xbf16>
    %10 = vector.extract_strided_slice %7 {offsets = [0, 0, 2, 0], sizes = [1, 16, 16, 4], strides = [1, 1, 1, 1]} : vector<1x16x18x4xbf16> to vector<1x16x16x4xbf16>
    %11 = vector.extract_strided_slice %6 {offsets = [0, 1, 0, 0], sizes = [1, 16, 18, 4], strides = [1, 1, 1, 1]} : vector<1x18x18x4xbf16> to vector<1x16x18x4xbf16>
    %12 = vector.extract_strided_slice %11 {offsets = [0, 0, 0, 0], sizes = [1, 16, 16, 4], strides = [1, 1, 1, 1]} : vector<1x16x18x4xbf16> to vector<1x16x16x4xbf16>
    %13 = vector.extract_strided_slice %11 {offsets = [0, 0, 1, 0], sizes = [1, 16, 16, 4], strides = [1, 1, 1, 1]} : vector<1x16x18x4xbf16> to vector<1x16x16x4xbf16>
    %14 = vector.extract_strided_slice %11 {offsets = [0, 0, 2, 0], sizes = [1, 16, 16, 4], strides = [1, 1, 1, 1]} : vector<1x16x18x4xbf16> to vector<1x16x16x4xbf16>
    %15 = vector.extract_strided_slice %6 {offsets = [0, 2, 0, 0], sizes = [1, 16, 18, 4], strides = [1, 1, 1, 1]} : vector<1x18x18x4xbf16> to vector<1x16x18x4xbf16>
    %16 = vector.extract_strided_slice %15 {offsets = [0, 0, 0, 0], sizes = [1, 16, 16, 4], strides = [1, 1, 1, 1]} : vector<1x16x18x4xbf16> to vector<1x16x16x4xbf16>
    %17 = vector.extract_strided_slice %15 {offsets = [0, 0, 1, 0], sizes = [1, 16, 16, 4], strides = [1, 1, 1, 1]} : vector<1x16x18x4xbf16> to vector<1x16x16x4xbf16>
    %18 = vector.extract_strided_slice %15 {offsets = [0, 0, 2, 0], sizes = [1, 16, 16, 4], strides = [1, 1, 1, 1]} : vector<1x16x18x4xbf16> to vector<1x16x16x4xbf16>
    %19 = tpu.concatenate %8, %9, %10, %12, %13, %14, %16, %17, %18 in 3 : vector<1x16x16x4xbf16>, vector<1x16x16x4xbf16>, vector<1x16x16x4xbf16>, vector<1x16x16x4xbf16>, vector<1x16x16x4xbf16>, vector<1x16x16x4xbf16>, vector<1x16x16x4xbf16>, vector<1x16x16x4xbf16>, vector<1x16x16x4xbf16> -> vector<1x16x16x36xbf16>
    %20 = vector.shape_cast %19 : vector<1x16x16x36xbf16> to vector<256x36xbf16>
    %c0_3 = arith.constant 0 : index
    %c0_4 = arith.constant 0 : index
    %21 = vector.load %arg3[%c0_3, %c0_4] : memref<36x8xbf16, #tpu.memory_space<vmem>>, vector<36x8xbf16>
    %cst = arith.constant dense<0.000000e+00> : vector<256x8xf32>
    %22 = tpu.matmul %20, %21, %cst {dimension_numbers = #tpu.dot_dimension_numbers<[1], [0], [0], [1], [0, 0, 1, 1], [], []>} : vector<256x36xbf16>, vector<36x8xbf16>, vector<256x8xf32> -> vector<256x8xf32>
    %23 = vector.shape_cast %22 : vector<256x8xf32> to vector<1x16x16x8xf32>
    %c0_5 = arith.constant 0 : index
    %c0_6 = arith.constant 0 : index
    %c0_7 = arith.constant 0 : index
    %c0_8 = arith.constant 0 : index
    %24 = vector.load %arg4[%c0_5, %c0_6, %c0_7, %c0_8] : memref<1x16x16x8xf32, #tpu.memory_space<vmem>>, vector<1x16x16x8xf32>
    tpu.vector_store %arg4[%c0_5, %c0_6, %c0_7, %c0_8], %23 {strides = array<i32>} : memref<1x16x16x8xf32, #tpu.memory_space<vmem>>, vector<1x16x16x8xf32>,
    %c0_9 = arith.constant 0 : index
    %c0_10 = arith.constant 0 : index
    %c0_11 = arith.constant 0 : index
    %25 = vector.load %arg5[%c0_9, %c0_10, %c0_11] : memref<1x2x8xf32, #tpu.memory_space<vmem>>, vector<1x1x8xf32>
    %26 = vector.shape_cast %25 : vector<1x1x8xf32> to vector<1x8xf32>
    %cst_12 = arith.constant dense<0.000000e+00> : vector<8xf32>
    %27 = vector.multi_reduction <add>, %22, %cst_12 [0] : vector<256x8xf32> to vector<8xf32>
    %28 = vector.shape_cast %27 : vector<8xf32> to vector<1x8xf32>
    %29 = arith.addf %26, %28 : vector<1x8xf32>
    %c0_13 = arith.constant 0 : index
    %c0_14 = arith.constant 0 : index
    %c0_15 = arith.constant 0 : index
    %30 = vector.load %arg5[%c0_13, %c0_14, %c0_15] : memref<1x2x8xf32, #tpu.memory_space<vmem>>, vector<1x1x8xf32>
    %31 = vector.shape_cast %30 : vector<1x1x8xf32> to vector<1x8xf32>
    %32 = vector.shape_cast %29 : vector<1x8xf32> to vector<1x1x8xf32>
    tpu.vector_store %arg5[%c0_13, %c0_14, %c0_15], %32 {strides = array<i32>} : memref<1x2x8xf32, #tpu.memory_space<vmem>>, vector<1x1x8xf32>,
    %c0_16 = arith.constant 0 : index
    %c1 = arith.constant 1 : index
    %c0_17 = arith.constant 0 : index
    %33 = vector.load %arg5[%c0_16, %c1, %c0_17] : memref<1x2x8xf32, #tpu.memory_space<vmem>>, vector<1x1x8xf32>
    %34 = vector.shape_cast %33 : vector<1x1x8xf32> to vector<1x8xf32>
    %35 = arith.mulf %22, %22 : vector<256x8xf32>
    %cst_18 = arith.constant dense<0.000000e+00> : vector<8xf32>
    %36 = vector.multi_reduction <add>, %35, %cst_18 [0] : vector<256x8xf32> to vector<8xf32>
    %37 = vector.shape_cast %36 : vector<8xf32> to vector<1x8xf32>
    %38 = arith.addf %34, %37 : vector<1x8xf32>
    %c0_19 = arith.constant 0 : index
    %c1_20 = arith.constant 1 : index
    %c0_21 = arith.constant 0 : index
    %39 = vector.load %arg5[%c0_19, %c1_20, %c0_21] : memref<1x2x8xf32, #tpu.memory_space<vmem>>, vector<1x1x8xf32>
    %40 = vector.shape_cast %39 : vector<1x1x8xf32> to vector<1x8xf32>
    %41 = vector.shape_cast %38 : vector<1x8xf32> to vector<1x1x8xf32>
    tpu.vector_store %arg5[%c0_19, %c1_20, %c0_21], %41 {strides = array<i32>} : memref<1x2x8xf32, #tpu.memory_space<vmem>>, vector<1x1x8xf32>,
    return
  }
  func.func @transform_0(%arg0: i32, %arg1: i32) -> (i32, i32, i32, i32) {
    %c0_i32 = arith.constant 0 : i32
    %c0_i32_0 = arith.constant 0 : i32
    %c0_i32_1 = arith.constant 0 : i32
    %c0_i32_2 = arith.constant 0 : i32
    return %arg0, %c0_i32, %c0_i32_0, %c0_i32_1 : i32, i32, i32, i32
  }
  func.func @transform_1(%arg0: i32, %arg1: i32) -> (i32, i32) {
    %c0_i32 = arith.constant 0 : i32
    %c0_i32_0 = arith.constant 0 : i32
    %c0_i32_1 = arith.constant 0 : i32
    return %c0_i32, %c0_i32_0 : i32, i32
  }
  func.func @transform_2(%arg0: i32, %arg1: i32) -> (i32, i32, i32, i32) {
    %c0_i32 = arith.constant 0 : i32
    %c0_i32_0 = arith.constant 0 : i32
    %c0_i32_1 = arith.constant 0 : i32
    return %arg0, %arg1, %c0_i32, %c0_i32_0 : i32, i32, i32, i32
  }
  func.func @transform_3(%arg0: i32, %arg1: i32) -> (i32, i32, i32) {
    %c0_i32 = arith.constant 0 : i32
    %c0_i32_0 = arith.constant 0 : i32
    %c0_i32_1 = arith.constant 0 : i32
    return %arg0, %c0_i32, %c0_i32_0 : i32, i32, i32
  }
}

</mosaic_0001>

<bundles_post_ra>
// kernel: tpu_custom_call.1
= control target key start
LH: loop header
LB: loop body
LE: loop exit
PB: predicated region body
PF: predicated region fallthrough
CT: control target
= control target key end

     0   :  { %9 = vsyncpa [#allocation3], 0  ;;  %s2870_s0 = inlined_call_operand.vmem [shape: bf16[2,18,18,4], index: 0, kind: input, shape index: {}]   ;;  %s2871_s1 = inlined_call_operand.vmem [shape: bf16[36,8], index: 1, kind: input, shape index: {}]   ;;  %s2872_s2 = inlined_call_operand.vmem [shape: f32[2,16,16,8], index: 2, kind: output, shape index: {0}]   ;;  %s2873_s3 = inlined_call_operand.hbm [shape: f32[2,2,8], index: 3, kind: output, shape index: {1}]  }
   0x1   :  { %11 = vsyncpa [#allocation3 + $0x1], 0  ;;  %s2122_s12 = smov 0   ;;  %s2124_s13 = smov 0  }
   0x2   :  { %s2126_s14 = smov 0   ;;  %s2128_s15 = smov 0  }
   0x3   :  { %s2130_s16 = smov 0   ;;  %s2132_s17 = smov 0  }
   0x4 LB: > { %s1774_s18 = sadd.s32 4294967295, %s2090_s17   ;;  %s1775_s19 = sadd.s32 4294967294, %s2090_s17   ;;  %s2090_s17 = sphi %s2132_s17, %s17_s17   ;;  %s2086_s16 = sphi %s2130_s16, %s2880_s16   ;;  %s2082_s15 = sphi %s2128_s15, %s2879_s15   ;;  %s2078_s14 = sphi %s2126_s14, %s2878_s14   ;;  %s2074_s13 = sphi %s2124_s13, %s2877_s13   ;;  %s2070_s12 = sphi %s2122_s12, %s2876_s12  }
   0x5   : > { %s29_s20 = sadd.s32 1, %s2086_s16  ;;  %s111_s21 = sadd.s32 1, %s2078_s14 }
   0x6   : > { %p31_p0 = scmp.ge.s32.totalorder %s29_s20, 2  ;;  %p121_p1 = scmp.ne.s32.totalorder %s2078_s14, %s2074_s13 }
   0x7   : > { %p122_p2 = scmp.eq.s32.totalorder %s1774_s18, 1  ;;  %p127_p3 = scmp.ne.s32.totalorder %s2074_s13, %s2070_s12 }
   0x8   : > { %s2882_s20 = smov (%p31_p0, %s29_s20), 0  ;;  %p128_p5 = scmp.eq.s32.totalorder %s1775_s19, 1 }
   0x9   : > { %p2162_p4 = por %p122_p2, %p121_p1  ;;  %s108_s23 = ssub.s32 %s2086_s16, %s2882_s20 }
   0xa   : > { %p1778_p6 = scmp.ge.s32.totalorder %s2090_s17, 1  ;;  %p109_p7 = scmp.eq.s32.totalorder %s108_s23, 0 }
   0xb   : > { %p2169_p8 = por %p128_p5, %p127_p3  ;;  %p157_p9 = scmp.lt.s32.totalorder %s2090_s17, 3 }
   0xc   : > { %s2175_s25 = scalar_select %p109_p7, %s2078_s14, %s111_s21  }
   0xd   : > { %p158_p10 = pnand %p1778_p6, %p157_p9 }
   0xe   : > { %p191_p11 = scmp.lt.s32.totalorder (!%p158_p10), %s2082_s15, 1  ;;  %vm625_vm0 = vcmask (!%p158_p10), 1046528   ;;  %s2092_s4 = smov (!%p158_p10), 12   ;;  %vm400_vm1 = vsmask.f32 (!%p158_p10), 7424  ;;  %v1993_v44 = vld [vmem:[%s2871_s1] sm:$0xff] (!%p158_p10)  }
   0xf   : > { %161 = sbr.rel (%p158_p10) target bundleno = 649 (0x289), region = 28  ;;  %s2093_s5 = smov (!%p158_p10), 20   ;;  %1862 = vmatprep.subr.bf16.mxu0 (!%p158_p10), %v1993_v44  ;;  %v1995_v46 = vld [vmem:[%s2871_s1 + $0x8] sm:$0xff] (!%p158_p10)   ;;  %1900 = vmatprep.subr.bf16.mxu1 (!%p158_p10), %v1993_v44  ;;  %v1997_v50 = vld [vmem:[%s2871_s1 + $0x10] ss:$0 sps:$4 sm:$0x33] (!%p158_p10)  }
  0x10   : > { %s2094_s6 = smov (!%p158_p10), 8   ;;  %s2095_s7 = smov (!%p158_p10), 4   ;;  %1863 = vmatpush3.bf16.msra.mxu0 (!%p158_p10), %v1993_v44  ;;  %1903 = vmatpush3.bf16.msra.mxu1 (!%p158_p10), %v1993_v44  ;;  %vm1261_vm2 = vcmask (!%p158_p10), 1041408   ;;  %vm944_vm3 = vcmask (!%p158_p10), 31744   ;;  %vm977_vm4 = vcmask (!%p158_p10), 64512   ;;  %vm1010_vm5 = vcmask (!%p158_p10), 97280  }
  0x11   : > { %s2096_s8 = smov (!%p158_p10), 16   ;;  %s2097_s11 = smov (!%p158_p10), 24   ;;  %1864 = vmatprep.subr.bf16.mxu0 (!%p158_p10), %v1995_v46  ;;  %1901 = vmatprep.subr.bf16.mxu1 (!%p158_p10), %v1995_v46  ;;  %v1263_v54 = vsel (!%p158_p10), %vm1261_vm2, %v1997_v50, 0  ;;  %vm1043_vm6 = vcmask (!%p158_p10), 130048   ;;  %vm1076_vm7 = vcmask (!%p158_p10), 162816   ;;  %vm1109_vm8 = vcmask (!%p158_p10), 195584  }
  0x12   : > { %s2098_s21 = smov (!%p158_p10), 28   ;;  %s2099_s28 = smov (!%p158_p10), 32   ;;  %vm1142_vm9 = vcmask (!%p158_p10), 228352   ;;  %vm1175_vm10 = vcmask (!%p158_p10), 261120   ;;  %vm1228_vm11 = vcmask (!%p158_p10), 293888   ;;  %vm212_vm12 = vcmask (!%p158_p10), 58368  }
  0x13   : > { %vm1529_vm13 = vcmask (!%p158_p10), 57344  }
  0x14   : > { %1865 = vmatpush3.bf16.msra.mxu0 (!%p158_p10), %v1995_v46  ;;  %1904 = vmatpush3.bf16.msra.mxu1 (!%p158_p10), %v1995_v46 }
  0x15   : > { %1906 = vmatprep.subr.msk.bf16.mxu0 (!%p158_p10), %vm1261_vm2, %v1997_v50  ;;  %1907 = vmatprep.subr.msk.bf16.mxu1 (!%p158_p10), %vm1261_vm2, %v1997_v50 }
  0x16   : > { %s2179_s26 = scalar_select %p191_p11, %s2082_s15, 1 }
  0x18   : > { %s1908_s27 = smul.u32 216, %s2179_s26  ;;  %1867 = vmatpush3.bf16.msra.mxu0 %v1263_v54  ;;  %1905 = vmatpush3.bf16.msra.mxu1 %v1263_v54  ;;  %s1842_s29 = sshll.u32 %s2179_s26, 8 }
  0x19   : > { %s188_s26 = sand.u32 1, %s2074_s13  }
  0x1a   : > { %s2185_s30 = scalar_lea.vmem %s2870_s0, %s1908_s27  ;;  %s1646_s19 = scalar_lea.sflag [#allocation3], %s188_s26 }
  0x1b   : > { %v2188_v0 = vld [vmem:[%s2185_s30 + $0x18] sm:$0xff]   ;;  %v2191_v1 = vld [vmem:[%s2185_s30 + $0xc] sm:$0xff]   ;;  %v1975_v2 = vld [vmem:[%s2185_s30 + $0x14] ss:$0 sps:$4 sm:$0x11]  }
  0x1c   : > { %713 = vrot.lane.b32.xlu1 %v2188_v0, %s2092_s4  ;;  %v2197_v3 = vld [vmem:[%s2185_s30] sm:$0xff]   ;;  %711 = vrot.lane.b32.xlu0 %v2191_v1, %s2092_s4  ;;  %v629_v4 = vrot.slane %v2191_v1, 1  ;;  %v630_v5 = vrot.slane %v1975_v2, 1  ;;  %v1977_v6 = vld [vmem:[%s2185_s30 + $0x8] ss:$0 sps:$4 sm:$0x11]  }
  0x1d   : > { %v626_v7 = vrot.slane %v2197_v3, 1  ;;  %v402_v8 = vshrl.u32 %v2197_v3, 16  ;;  %v404_v9 = vshll.u32 %v2197_v3, 16  ;;  %v414_v10 = vshrl.u32 %v2191_v1, 16  ;;  %v2217_v30 = vld [vmem:[%s2185_s30 + $0x24] sm:$0xff]   ;;  %v2247_v49 = vld [vmem:[%s2185_s30 + $0x30] sm:$0xff]  }
  0x1e   : > { %v631_v11 = vsel %vm625_vm0, %v629_v4, %v630_v5  ;;  %v627_v12 = vrot.slane %v1977_v6, 1  ;;  %v409_v13 = vshll.u32 %v1977_v6, 16  ;;  %v1978_v14 = vld [vmem:[%s2185_s30 + $0x20] ss:$0 sps:$4 sm:$0x11]   ;;  %v416_v15 = vshll.u32 %v2191_v1, 16 }
  0x1f   : > { %v406_v16 = vrot.slane %v404_v9, 1  ;;  %v421_v17 = vshll.u32 %v1975_v2, 16  ;;  %v428_v18 = vshll.u32 %v2188_v0, 16  ;;  %v632_v23 = vrot.slane %v2188_v0, 1  ;;  %v2263_v60 = vld [vmem:[%s2185_s30 + $0x3c] sm:$0xff]  }
  0x20   : > { %793 = vrot.lane.b32.xlu0 %v631_v11, %s2093_s5  ;;  %v628_v19 = vsel %vm625_vm0, %v626_v7, %v627_v12  ;;  %v411_v20 = vrot.slane %v409_v13, 1  ;;  %v418_v21 = vrot.slane %v416_v15, 1  ;;  %v426_v25 = vshrl.u32 %v2188_v0, 16  ;;  %v1980_v33 = vld [vmem:[%s2185_s30 + $0x2c] ss:$0 sps:$4 sm:$0x11]  }
  0x21   : > { %674 = vrot.lane.b32.xlu1 %v628_v19, %s2094_s6  ;;  %v407_v22 = vor.u32 %v406_v16, %v402_v8  ;;  %v423_v24 = vrot.slane %v421_v17, 1  ;;  %v633_v26 = vrot.slane %v1978_v14, 1  ;;  %v430_v28 = vrot.slane %v428_v18, 1  ;;  %v1982_v51 = vld [vmem:[%s2185_s30 + $0x38] ss:$0 sps:$4 sm:$0x11]  }
  0x22   : > { %v419_v27 = vor.u32 %v418_v21, %v414_v10  ;;  %v433_v29 = vshll.u32 %v1978_v14, 16  ;;  %v440_v37 = vshll.u32 %v2217_v30, 16  ;;  %v438_v39 = vshrl.u32 %v2217_v30, 16  ;;  %v1984_v2 = vld [vmem:[%s2185_s30 + $0x44] ss:$0 sps:$4 sm:$0x11]  }
  0x23   : > { %v412_v31 = vsel %vm400_vm1, %v407_v22, %v411_v20  ;;  %v634_v34 = vsel %vm625_vm0, %v632_v23, %v633_v26  ;;  %v431_v35 = vor.u32 %v430_v28, %v426_v25  ;;  %v445_v41 = vshll.u32 %v1980_v33, 16  ;;  %v2288_v14 = vld [vmem:[%s2185_s30 + $0x48] sm:$0xff]   ;;  %v1986_v16 = vld [vmem:[%s2185_s30 + $0x50] ss:$0 sps:$4 sm:$0x11]   ;;  %v2301_v23 = vld [vmem:[%s2185_s30 + $0x54] sm:$0xff]  }
  0x24   : > { %593 = vrot.lane.b32.xlu0 %v412_v31, %s2095_s7  ;;  %v424_v32 = vsel %vm400_vm1, %v419_v27, %v423_v24  ;;  %v435_v36 = vrot.slane %v433_v29, 1  ;;  %v442_v40 = vrot.slane %v440_v37, 1  ;;  %v635_v47 = vrot.slane %v2217_v30, 1  ;;  %v1988_v27 = vld [vmem:[%s2185_s30 + $0x5c] ss:$0 sps:$4 sm:$0x11]  }
  0x25   : > { %676 = vrot.lane.b32.xlu1 %v631_v11, %s2094_s6  ;;  %v447_v43 = vrot.slane %v445_v41, 1  ;;  %v636_v48 = vrot.slane %v1980_v33, 1  ;;  %v452_v53 = vshll.u32 %v2247_v49, 16  ;;  %v450_v55 = vshrl.u32 %v2247_v49, 16 }
  0x26   : > { %v436_v38 = vsel %vm400_vm1, %v431_v35, %v435_v36  ;;  %v443_v42 = vor.u32 %v442_v40, %v438_v39  ;;  %v457_v57 = vshll.u32 %v1982_v51, 16  ;;  %v638_v62 = vrot.slane %v2247_v49, 1  ;;  %v2326_v39 = vld [vmem:[%s2185_s30 + $0x60] sm:$0xff]   ;;  %v1990_v41 = vld [vmem:[%s2185_s30 + $0x68] ss:$0 sps:$4 sm:$0x11]  }
  0x27   : > { %v637_v52 = vsel %vm625_vm0, %v635_v47, %v636_v48  ;;  %v454_v56 = vrot.slane %v452_v53, 1  ;;  %v639_v63 = vrot.slane %v1982_v51, 1  ;;  %v464_v4 = vshll.u32 %v2263_v60, 16  ;;  %v2339_v48 = vld [vmem:[%s2185_s30 + $0x6c] sm:$0xff]  }
  0x28   : > { %595 = vrot.lane.b32.xlu0 %v424_v32, %s2095_s7  ;;  %v448_v45 = vsel %vm400_vm1, %v443_v42, %v447_v43  ;;  %v459_v59 = vrot.slane %v457_v57, 1  ;;  %v462_v6 = vshrl.u32 %v2263_v60, 16  ;;  %v469_v8 = vshll.u32 %v1984_v2, 16  ;;  %v1992_v53 = vld [vmem:[%s2185_s30 + $0x74] ss:$0 sps:$4 sm:$0x11]  }
  0x29   : > { %795 = vrot.lane.b32.xlu1 %v634_v34, %s2093_s5  ;;  %v455_v58 = vor.u32 %v454_v56, %v450_v55  ;;  %v640_v5 = vsel %vm625_vm0, %v638_v62, %v639_v63  ;;  %v466_v7 = vrot.slane %v464_v4, 1  ;;  %v641_v12 = vrot.slane %v2263_v60, 1 }
  0x2a   : > { %v471_v10 = vrot.slane %v469_v8, 1  ;;  %v642_v13 = vrot.slane %v1984_v2, 1  ;;  %v476_v17 = vshll.u32 %v2288_v14, 16  ;;  %v474_v18 = vshrl.u32 %v2288_v14, 16 }
  0x2b   : > { %v460_v61 = vsel %vm400_vm1, %v455_v58, %v459_v59  ;;  %v467_v9 = vor.u32 %v466_v7, %v462_v6  ;;  %v481_v20 = vshll.u32 %v1986_v16, 16  ;;  %v644_v25 = vrot.slane %v2288_v14, 1 }
  0x2c   : > { %758 = vrot.lane.b32.xlu0 %v424_v32, %s2096_s8  ;;  %v643_v15 = vsel %vm625_vm0, %v641_v12, %v642_v13  ;;  %v478_v19 = vrot.slane %v476_v17, 1  ;;  %v645_v26 = vrot.slane %v1986_v16, 1  ;;  %v488_v28 = vshll.u32 %v2301_v23, 16  ;;  %v1996_v13 = vld [vmem:[%s2185_s30 + $0x80] ss:$0 sps:$4 sm:$0x11]  }
  0x2d   : > { %760 = vrot.lane.b32.xlu1 %v436_v38, %s2096_s8  ;;  %v472_v11 = vsel %vm400_vm1, %v467_v9, %v471_v10  ;;  %v483_v22 = vrot.slane %v481_v20, 1  ;;  %v486_v31 = vshrl.u32 %v2301_v23, 16  ;;  %v493_v33 = vshll.u32 %v1988_v27, 16  ;;  %v2364_v9 = vld [vmem:[%s2185_s30 + $0x78] sm:$0xff]  }
  0x2e   : > { %v479_v21 = vor.u32 %v478_v19, %v474_v18  ;;  %v646_v29 = vsel %vm625_vm0, %v644_v25, %v645_v26  ;;  %v490_v32 = vrot.slane %v488_v28, 1  ;;  %v647_v37 = vrot.slane %v2301_v23, 1  ;;  %v2382_v28 = vld [vmem:[%s2185_s30 + $0x84] sm:$0xff]  }
  0x2f   : > { %v495_v35 = vrot.slane %v493_v33, 1  ;;  %v500_v42 = vshll.u32 %v2326_v39, 16  ;;  %v498_v43 = vshrl.u32 %v2326_v39, 16  ;;  %v650_v51 = vrot.slane %v2326_v39, 1 }
  0x30   : > { %830 = vrot.lane.b32.xlu0 %v2188_v0, %s2097_s11  ;;  %v484_v24 = vsel %vm400_vm1, %v479_v21, %v483_v22  ;;  %v512_v54 = vshll.u32 %v2339_v48, 16  ;;  %v510_v56 = vshrl.u32 %v2339_v48, 16  ;;  %v517_v58 = vshll.u32 %v1992_v53, 16 }
  0x31   : > { %832 = vrot.lane.b32.xlu1 %v2217_v30, %s2097_s11  ;;  %v502_v44 = vrot.slane %v500_v42, 1  ;;  %v653_v6 = vrot.slane %v2339_v48, 1  ;;  %v654_v7 = vrot.slane %v1992_v53, 1  ;;  %v522_v19 = vshrl.u32 %v2364_v9, 16 }
  0x32   : > { %v514_v57 = vrot.slane %v512_v54, 1  ;;  %v519_v63 = vrot.slane %v517_v58, 1  ;;  %v529_v21 = vshll.u32 %v1996_v13, 16  ;;  %v656_v33 = vrot.slane %v2364_v9, 1 }
  0x33   : > { %v503_v46 = vor.u32 %v502_v44, %v498_v43 }
  0x34   : > { %877 = vrot.lane.b32.xlu0 %v436_v38, %s2098_s21  ;;  %v515_v62 = vor.u32 %v514_v57, %v510_v56 }
  0x35   : > { %879 = vrot.lane.b32.xlu1 %v448_v45, %s2098_s21 }
  0x36   : > { %v520_v4 = vsel %vm400_vm1, %v515_v62, %v519_v63 }
  0x38   : > { %912 = vrot.lane.b32.xlu0 %v634_v34, %s2099_s28 }
  0x39   : > { %597 = vrot.lane.b32.xlu1 %v436_v38, %s2095_s7  ;;  %v648_v38 = vrot.slane %v1988_v27, 1 }
  0x3b   : > { %v649_v40 = vsel %vm625_vm0, %v647_v37, %v648_v38  ;;  %v1999_v38 = vld [vmem:[%s2185_s30 + $0x8c] ss:$0 sps:$4 sm:$0x11]  }
  0x3c   : > { %914 = vrot.lane.b32.xlu0 %v637_v52, %s2099_s28 }
  0x3d   : > { %599 = vrot.lane.b32.xlu1 %v448_v45, %s2095_s7 }
  0x40   : > { %678 = vrot.lane.b32.xlu0 %v634_v34, %s2094_s6  ;;  %v491_v34 = vor.u32 %v490_v32, %v486_v31 }
  0x41   : > { %680 = vrot.lane.b32.xlu1 %v637_v52, %s2094_s6 }
  0x42   : > { %v496_v36 = vsel %vm400_vm1, %v491_v34, %v495_v35  ;;  %v657_v34 = vrot.slane %v1996_v13, 1 }
  0x44   : > { %715 = vrot.lane.b32.xlu0 %v2217_v30, %s2092_s4 }
  0x45   : > { %717 = vrot.lane.b32.xlu1 %v2247_v49, %s2092_s4 }
  0x48   : > { %762 = vrot.lane.b32.xlu0 %v448_v45, %s2096_s8  ;;  %v505_v45 = vshll.u32 %v1990_v41, 16 }
  0x49   : > { %764 = vrot.lane.b32.xlu1 %v460_v61, %s2096_s8 }
  0x4a   : > { %v507_v47 = vrot.slane %v505_v45, 1  ;;  %v658_v45 = vsel %vm625_vm0, %v656_v33, %v657_v34 }
  0x4c   : > { %797 = vrot.lane.b32.xlu0 %v637_v52, %s2093_s5  ;;  %v508_v50 = vsel %vm400_vm1, %v503_v46, %v507_v47  ;;  %v651_v52 = vrot.slane %v1990_v41, 1 }
  0x4d   : > { %799 = vrot.lane.b32.xlu1 %v640_v5, %s2093_s5 }
  0x4e   : > { %v652_v55 = vsel %vm625_vm0, %v650_v51, %v651_v52  ;;  %v541_v52 = vshll.u32 %v1999_v38, 16 }
  0x50   : > { %834 = vrot.lane.b32.xlu0 %v2247_v49, %s2097_s11 }
  0x51   : > { %836 = vrot.lane.b32.xlu1 %v2263_v60, %s2097_s11 }
  0x54   : > { %881 = vrot.lane.b32.xlu0 %v460_v61, %s2098_s21 }
  0x55   : > { %883 = vrot.lane.b32.xlu1 %v472_v11, %s2098_s21 }
  0x58   : > { %916 = vrot.lane.b32.xlu0 %v640_v5, %s2099_s28 }
  0x59   : > { %601 = vrot.lane.b32.xlu1 %v460_v61, %s2095_s7 }
  0x5c   : > { %918 = vrot.lane.b32.xlu0 %v643_v15, %s2099_s28 }
  0x5d   : > { %603 = vrot.lane.b32.xlu1 %v472_v11, %s2095_s7 }
  0x60   : > { %682 = vrot.lane.b32.xlu0 %v640_v5, %s2094_s6 }
  0x61   : > { %684 = vrot.lane.b32.xlu1 %v643_v15, %s2094_s6 }
  0x64   : > { %719 = vrot.lane.b32.xlu0 %v2263_v60, %s2092_s4 }
  0x65   : > { %721 = vrot.lane.b32.xlu1 %v2288_v14, %s2092_s4 }
  0x68   : > { %766 = vrot.lane.b32.xlu0 %v472_v11, %s2096_s8  ;;  %v655_v11 = vsel %vm625_vm0, %v653_v6, %v654_v7  ;;  %v659_v6 = vrot.slane %v2382_v28, 1  ;;  %v660_v7 = vrot.slane %v1999_v38, 1 }
  0x69   : > { %768 = vrot.lane.b32.xlu1 %v484_v24, %s2096_s8 }
  0x6c   : > { %801 = vrot.lane.b32.xlu0 %v643_v15, %s2093_s5  ;;  %v524_v15 = vshll.u32 %v2364_v9, 16 }
  0x6d   : > { %803 = vrot.lane.b32.xlu1 %v646_v29, %s2093_s5 }
  0x6e   : > { %v526_v20 = vrot.slane %v524_v15, 1  ;;  %v2001_v15 = vld [vmem:[%s2185_s30 + $0x98] ss:$0 sps:$4 sm:$0x11]  }
  0x70   : > { %838 = vrot.lane.b32.xlu0 %v2288_v14, %s2097_s11  ;;  %v527_v27 = vor.u32 %v526_v20, %v522_v19 }
  0x71   : > { %840 = vrot.lane.b32.xlu1 %v2301_v23, %s2097_s11 }
  0x74   : > { %885 = vrot.lane.b32.xlu0 %v484_v24, %s2098_s21 }
  0x75   : > { %887 = vrot.lane.b32.xlu1 %v496_v36, %s2098_s21 }
  0x78   : > { %920 = vrot.lane.b32.xlu0 %v646_v29, %s2099_s28 }
  0x79   : > { %605 = vrot.lane.b32.xlu1 %v484_v24, %s2095_s7 }
  0x7c   : > { %922 = vrot.lane.b32.xlu0 %v649_v40, %s2099_s28 }
  0x7d   : > { %607 = vrot.lane.b32.xlu1 %v496_v36, %s2095_s7 }
  0x80   : > { %686 = vrot.lane.b32.xlu0 %v646_v29, %s2094_s6 }
  0x81   : > { %688 = vrot.lane.b32.xlu1 %v649_v40, %s2094_s6 }
  0x84   : > { %723 = vrot.lane.b32.xlu0 %v2301_v23, %s2092_s4 }
  0x85   : > { %725 = vrot.lane.b32.xlu1 %v2326_v39, %s2092_s4 }
  0x88   : > { %770 = vrot.lane.b32.xlu0 %v496_v36, %s2096_s8 }
  0x89   : > { %772 = vrot.lane.b32.xlu1 %v508_v50, %s2096_s8 }
  0x8c   : > { %805 = vrot.lane.b32.xlu0 %v649_v40, %s2093_s5  ;;  %v536_v40 = vshll.u32 %v2382_v28, 16 }
  0x8d   : > { %807 = vrot.lane.b32.xlu1 %v652_v55, %s2093_s5 }
  0x8e   : > { %v714_v59 = vpop.permute.xlu1 %713  ;;  %v712_v61 = vpop.permute.xlu0 %711  ;;  %v538_v51 = vrot.slane %v536_v40, 1 }
  0x90   : > { %842 = vrot.lane.b32.xlu0 %v2326_v39, %s2097_s11 }
  0x91   : > { %844 = vrot.lane.b32.xlu1 %v2339_v48, %s2097_s11 }
  0x92   : > { %v794_v2 = vpop.permute.xlu0 %793 }
  0x93   : > { %v675_v5 = vpop.permute.xlu1 %674 }
  0x94   : > { %889 = vrot.lane.b32.xlu0 %v508_v50, %s2098_s21 }
  0x95   : > { %891 = vrot.lane.b32.xlu1 %v520_v4, %s2098_s21 }
  0x96   : > { %v594_v8 = vpop.permute.xlu0 %593 }
  0x97   : > { %v677_v10 = vpop.permute.xlu1 %676  ;;  %v946_v17 = vsel %vm944_vm3, %v2197_v3, %v594_v8  ;;  %v531_v3 = vrot.slane %v529_v21, 1  ;;  %v553_v21 = vshll.u32 %v2001_v15, 16 }
  0x98   : > { %924 = vrot.lane.b32.xlu0 %v652_v55, %s2099_s28  ;;  %v979_v25 = vsel %vm977_vm4, %v946_v17, %v675_v5 }
  0x99   : > { %609 = vrot.lane.b32.xlu1 %v508_v50, %s2095_s7  ;;  %v1012_v32 = vsel %vm1010_vm5, %v979_v25, %v712_v61  ;;  %v532_v37 = vsel %vm400_vm1, %v527_v27, %v531_v3  ;;  %v534_v50 = vshrl.u32 %v2382_v28, 16  ;;  %v543_v61 = vrot.slane %v541_v52, 1  ;;  %v2435_v27 = vld [vmem:[%s2185_s30 + $0x9c] sm:$0xff]  }
  0x9a   : > { %v596_v12 = vpop.permute.xlu0 %595 }
  0x9b   : > { %v796_v16 = vpop.permute.xlu1 %795  ;;  %v948_v24 = vsel %vm944_vm3, %v2191_v1, %v596_v12  ;;  %v661_v12 = vsel %vm625_vm0, %v659_v6, %v660_v7  ;;  %v665_v6 = vrot.slane %v2435_v27, 1 }
  0x9c   : > { %926 = vrot.lane.b32.xlu0 %v655_v11, %s2099_s28  ;;  %v981_v29 = vsel %vm977_vm4, %v948_v24, %v677_v10  ;;  %v2422_v10 = vld [vmem:[%s2185_s30 + $0x90] sm:$0xff]  }
  0x9d   : > { %611 = vrot.lane.b32.xlu1 %v520_v4, %s2095_s7  ;;  %v1014_v35 = vsel %vm1010_vm5, %v981_v29, %v714_v59  ;;  %v539_v59 = vor.u32 %v538_v51, %v534_v50  ;;  %v546_v19 = vshrl.u32 %v2422_v10, 16 }
  0x9e   : > { %v759_v18 = vpop.permute.xlu0 %758 }
  0x9f   : > { %v761_v22 = vpop.permute.xlu1 %760  ;;  %v1045_v1 = vsel %vm1043_vm6, %v1012_v32, %v759_v18  ;;  %v662_v32 = vrot.slane %v2422_v10, 1 }
  0xa0   : > { %690 = vrot.lane.b32.xlu0 %v652_v55, %s2094_s6  ;;  %v1078_v42 = vsel %vm1076_vm7, %v1045_v1, %v794_v2  ;;  %v1047_v43 = vsel %vm1043_vm6, %v1014_v35, %v761_v22  ;;  %v663_v1 = vrot.slane %v2001_v15, 1 }
  0xa1   : > { %692 = vrot.lane.b32.xlu1 %v655_v11, %s2094_s6  ;;  %v1080_v55 = vsel %vm1076_vm7, %v1047_v43, %v796_v16  ;;  %v548_v16 = vshll.u32 %v2422_v10, 16 }
  0xa2   : > { %v831_v26 = vpop.permute.xlu0 %830 }
  0xa3   : > { %v833_v31 = vpop.permute.xlu1 %832  ;;  %v1111_v44 = vsel %vm1109_vm8, %v1078_v42, %v831_v26  ;;  %v550_v20 = vrot.slane %v548_v16, 1  ;;  %v555_v26 = vrot.slane %v553_v21, 1  ;;  %v2005_v16 = vld [vmem:[%s2185_s30 + $0xb0] ss:$0 sps:$4 sm:$0x11]  }
  0xa4   : > { %727 = vrot.lane.b32.xlu0 %v2339_v48, %s2092_s4  ;;  %v1113_v56 = vsel %vm1109_vm8, %v1080_v55, %v833_v31 }
  0xa5   : > { %729 = vrot.lane.b32.xlu1 %v2364_v9, %s2092_s4  ;;  %v551_v25 = vor.u32 %v550_v20, %v546_v19 }
  0xa6   : > { %v878_v36 = vpop.permute.xlu0 %877 }
  0xa7   : > { %v880_v41 = vpop.permute.xlu1 %879  ;;  %v1144_v46 = vsel %vm1142_vm9, %v1111_v44, %v878_v36  ;;  %v556_v35 = vsel %vm400_vm1, %v551_v25, %v555_v26  ;;  %v2003_v36 = vld [vmem:[%s2185_s30 + $0xa4] ss:$0 sps:$4 sm:$0x11]   ;;  %v664_v44 = vsel %vm625_vm0, %v662_v32, %v663_v1 }
  0xa8   : > { %774 = vrot.lane.b32.xlu0 %v520_v4, %s2096_s8  ;;  %v1146_v57 = vsel %vm1142_vm9, %v1113_v56, %v880_v41  ;;  %v544_v4 = vsel %vm400_vm1, %v539_v59, %v543_v61  ;;  %v565_v51 = vshll.u32 %v2003_v36, 16  ;;  %v666_v7 = vrot.slane %v2003_v36, 1 }
  0xa9   : > { %776 = vrot.lane.b32.xlu1 %v532_v37, %s2096_s8 }
  0xaa   : > { %v913_v47 = vpop.permute.xlu0 %912  ;;  %v567_v61 = vrot.slane %v565_v51, 1 }
  0xab   : > { %v598_v53 = vpop.permute.xlu1 %597  ;;  %v1177_v54 = vsel %vm1175_vm10, %v1144_v46, %v913_v47 }
  0xac   : > { %809 = vrot.lane.b32.xlu0 %v655_v11, %s2093_s5  ;;  %1868 = vmatprep.mubr.msk.bf16.mxu0 %vm1228_vm11, %v1177_v54  ;;  %v950_v29 = vsel %vm944_vm3, %v2188_v0, %v598_v53 }
  0xad   : > { %811 = vrot.lane.b32.xlu1 %v658_v45, %s2093_s5 }
  0xae   : > { %v915_v58 = vpop.permute.xlu0 %914 }
  0xaf   : > { %v600_v62 = vpop.permute.xlu1 %599  ;;  %v1179_v63 = vsel %vm1175_vm10, %v1146_v57, %v915_v58 }
  0xb0   : > { %846 = vrot.lane.b32.xlu0 %v2364_v9, %s2097_s11  ;;  %1869 = vmatmul.mubr.msk.bf16.vlgmr.msra.gmra.mrb[0].mxu0 %vm1228_vm11, %v1179_v63  ;;  %v952_v40 = vsel %vm944_vm3, %v2217_v30, %v600_v62 }
  0xb1   : > { %848 = vrot.lane.b32.xlu1 %v2382_v28, %s2097_s11 }
  0xb2   : > { %v679_v2 = vpop.permute.xlu0 %678 }
  0xb3   : > { %v681_v5 = vpop.permute.xlu1 %680  ;;  %v983_v31 = vsel %vm977_vm4, %v950_v29, %v679_v2  ;;  %v2493_v29 = vld [vmem:[%s2185_s30 + $0xb4] sm:$0xff]  }
  0xb4   : > { %893 = vrot.lane.b32.xlu0 %v532_v37, %s2098_s21  ;;  %v985_v42 = vsel %vm977_vm4, %v952_v40, %v681_v5 }
  0xb5   : > { %895 = vrot.lane.b32.xlu1 %v544_v4, %s2098_s21 }
  0xb6   : > { %v716_v8 = vpop.permute.xlu0 %715 }
  0xb7   : > { %v718_v11 = vpop.permute.xlu1 %717  ;;  %v1016_v33 = vsel %vm1010_vm5, %v983_v31, %v716_v8 }
  0xb8   : > { %928 = vrot.lane.b32.xlu0 %v658_v45, %s2099_s28  ;;  %v1018_v46 = vsel %vm1010_vm5, %v985_v42, %v718_v11  ;;  %v2480_v11 = vld [vmem:[%s2185_s30 + $0xa8] sm:$0xff]  }
  0xb9   : > { %613 = vrot.lane.b32.xlu1 %v532_v37, %s2095_s7  ;;  %v560_v37 = vshll.u32 %v2435_v27, 16  ;;  %v570_v20 = vshrl.u32 %v2480_v11, 16 }
  0xba   : > { %v763_v13 = vpop.permute.xlu0 %762 }
  0xbb   : > { %v765_v17 = vpop.permute.xlu1 %764  ;;  %v1049_v0 = vsel %vm1043_vm6, %v1016_v33, %v763_v13  ;;  %v562_v30 = vrot.slane %v560_v37, 1  ;;  %v667_v13 = vsel %vm625_vm0, %v665_v6, %v666_v7  ;;  %v668_v33 = vrot.slane %v2480_v11, 1 }
  0xbc   : > { %930 = vrot.lane.b32.xlu0 %v661_v12, %s2099_s28  ;;  %v1051_v52 = vsel %vm1043_vm6, %v1018_v46, %v765_v17  ;;  %v572_v17 = vshll.u32 %v2480_v11, 16  ;;  %v582_v46 = vshrl.u32 %v2493_v29, 16  ;;  %v671_v6 = vrot.slane %v2493_v29, 1 }
  0xbd   : > { %615 = vrot.lane.b32.xlu1 %v544_v4, %s2095_s7 }
  0xbe   : > { %v798_v18 = vpop.permute.xlu0 %797  ;;  %v574_v21 = vrot.slane %v572_v17, 1  ;;  %v2009_v17 = vld [vmem:[%s2185_s30 + $0xc8] ss:$0 sps:$4 sm:$0x11]  }
  0xbf   : > { %v800_v22 = vpop.permute.xlu1 %799  ;;  %v1082_v41 = vsel %vm1076_vm7, %v1049_v0, %v798_v18  ;;  %v2007_v0 = vld [vmem:[%s2185_s30 + $0xbc] ss:$0 sps:$4 sm:$0x11]  }
  0xc0   : > { %694 = vrot.lane.b32.xlu0 %v658_v45, %s2094_s6  ;;  %v558_v45 = vshrl.u32 %v2435_v27, 16  ;;  %v1084_v55 = vsel %vm1076_vm7, %v1051_v52, %v800_v22  ;;  %v577_v22 = vshll.u32 %v2005_v16, 16  ;;  %v575_v26 = vor.u32 %v574_v21, %v570_v20 }
  0xc1   : > { %696 = vrot.lane.b32.xlu1 %v661_v12, %s2094_s6  ;;  %v589_v51 = vshll.u32 %v2007_v0, 16  ;;  %v672_v7 = vrot.slane %v2007_v0, 1 }
  0xc2   : > { %v835_v24 = vpop.permute.xlu0 %834  ;;  %v563_v59 = vor.u32 %v562_v30, %v558_v45 }
  0xc3   : > { %v837_v3 = vpop.permute.xlu1 %836  ;;  %v1115_v43 = vsel %vm1109_vm8, %v1082_v41, %v835_v24 }
  0xc4   : > { %731 = vrot.lane.b32.xlu0 %v2382_v28, %s2092_s4  ;;  %v1117_v56 = vsel %vm1109_vm8, %v1084_v55, %v837_v3  ;;  %v579_v3 = vrot.slane %v577_v22, 1 }
  0xc5   : > { %733 = vrot.lane.b32.xlu1 %v2422_v10, %s2092_s4 }
  0xc6   : > { %v882_v34 = vpop.permute.xlu0 %881  ;;  %v580_v37 = vsel %vm400_vm1, %v575_v26, %v579_v3 }
  0xc7   : > { %v884_v38 = vpop.permute.xlu1 %883  ;;  %v1148_v47 = vsel %vm1142_vm9, %v1115_v43, %v882_v34  ;;  %v669_v34 = vrot.slane %v2005_v16, 1 }
  0xc8   : > { %778 = vrot.lane.b32.xlu0 %v544_v4, %s2096_s8  ;;  %v1150_v57 = vsel %vm1142_vm9, %v1117_v56, %v884_v38  ;;  %v568_v4 = vsel %vm400_vm1, %v563_v59, %v567_v61  ;;  %v584_v38 = vshll.u32 %v2493_v29, 16  ;;  %v591_v61 = vrot.slane %v589_v51, 1 }
  0xc9   : > { %780 = vrot.lane.b32.xlu1 %v556_v35, %s2096_s8  ;;  %v670_v45 = vsel %vm625_vm0, %v668_v33, %v669_v34 }
  0xca   : > { %v917_v50 = vpop.permute.xlu0 %916 }
  0xcb   : > { %v602_v53 = vpop.permute.xlu1 %601  ;;  %v1181_v54 = vsel %vm1175_vm10, %v1148_v47, %v917_v50 }
  0xcc   : > { %813 = vrot.lane.b32.xlu0 %v661_v12, %s2093_s5  ;;  %1872 = vmatprep.mubr.msk.bf16.mxu0 %vm1228_vm11, %v1181_v54  ;;  %v954_v32 = vsel %vm944_vm3, %v2247_v49, %v602_v53 }
  0xcd   : > { %815 = vrot.lane.b32.xlu1 %v664_v44, %s2093_s5 }
  0xce   : > { %v919_v58 = vpop.permute.xlu0 %918 }
  0xcf   : > { %v604_v62 = vpop.permute.xlu1 %603  ;;  %v1183_v63 = vsel %vm1175_vm10, %v1150_v57, %v919_v58 }
  0xd0   : > { %850 = vrot.lane.b32.xlu0 %v2422_v10, %s2097_s11  ;;  %1873 = vmatmul.mubr.msk.bf16.gmra.mrb[4].mxu0 %vm1228_vm11, %v1183_v63  ;;  %v956_v41 = vsel %vm944_vm3, %v2263_v60, %v604_v62  ;;  %v586_v60 = vrot.slane %v584_v38, 1 }
  0xd1   : > { %852 = vrot.lane.b32.xlu1 %v2435_v27, %s2097_s11 }
  0xd2   : > { %v683_v2 = vpop.permute.xlu0 %682  ;;  %v587_v59 = vor.u32 %v586_v60, %v582_v46 }
  0xd3   : > { %v685_v5 = vpop.permute.xlu1 %684  ;;  %v987_v1 = vsel %vm977_vm4, %v954_v32, %v683_v2  ;;  %v2010_v32 = vld [vmem:[%s2185_s30 + $0xcc] sm:$0xff]  }
  0xd4   : > { %897 = vrot.lane.b32.xlu0 %v556_v35, %s2098_s21  ;;  %v989_v43 = vsel %vm977_vm4, %v956_v41, %v685_v5 }
  0xd5   : > { %899 = vrot.lane.b32.xlu1 %v568_v4, %s2098_s21 }
  0xd6   : > { %v720_v8 = vpop.permute.xlu0 %719 }
  0xd7   : > { %v722_v12 = vpop.permute.xlu1 %721 }
  0xd8   : > { %932 = vrot.lane.b32.xlu0 %v664_v44, %s2099_s28  ;;  %v1022_v47 = vsel %vm1010_vm5, %v989_v43, %v722_v12  ;;  %v2538_v12 = vld [vmem:[%s2185_s30 + $0xc0] sm:$0xff]  }
  0xd9   : > { %617 = vrot.lane.b32.xlu1 %v556_v35, %s2095_s7  ;;  %v1020_v35 = vsel %vm1010_vm5, %v987_v1, %v720_v8  ;;  %v747_v21 = vshrl.u32 %v2538_v12, 16 }
  0xda   : > { %v767_v15 = vpop.permute.xlu0 %766 }
  0xdb   : > { %v769_v18 = vpop.permute.xlu1 %768  ;;  %v1053_v49 = vsel %vm1043_vm6, %v1020_v35, %v767_v15  ;;  %v673_v15 = vsel %vm625_vm0, %v671_v6, %v672_v7  ;;  %v790_v35 = vrot.slane %v2538_v12, 1 }
  0xdc   : > { %934 = vrot.lane.b32.xlu0 %v667_v13, %s2099_s28  ;;  %v1055_v52 = vsel %vm1043_vm6, %v1022_v47, %v769_v18  ;;  %v749_v18 = vshll.u32 %v2538_v12, 16  ;;  %v866_v47 = vshrl.u32 %v2010_v32, 16 }
  0xdd   : > { %619 = vrot.lane.b32.xlu1 %v568_v4, %s2095_s7 }
  0xde   : > { %v802_v19 = vpop.permute.xlu0 %801  ;;  %v751_v22 = vrot.slane %v749_v18, 1 }
  0xdf   : > { %v804_v24 = vpop.permute.xlu1 %803  ;;  %v1086_v42 = vsel %vm1076_vm7, %v1053_v49, %v802_v19  ;;  %v2011_v49 = vld [vmem:[%s2185_s30 + $0xd4] ss:$0 sps:$4 sm:$0x11]  }
  0xe0   : > { %698 = vrot.lane.b32.xlu0 %v664_v44, %s2094_s6  ;;  %v1088_v55 = vsel %vm1076_vm7, %v1055_v52, %v804_v24  ;;  %v754_v24 = vshll.u32 %v2009_v17, 16  ;;  %v752_v3 = vor.u32 %v751_v22, %v747_v21  ;;  %v910_v6 = vrot.slane %v2011_v49, 1 }
  0xe1   : > { %700 = vrot.lane.b32.xlu1 %v667_v13, %s2094_s6 }
  0xe2   : > { %v839_v25 = vpop.permute.xlu0 %838 }
  0xe3   : > { %v841_v31 = vpop.permute.xlu1 %840  ;;  %v1119_v44 = vsel %vm1109_vm8, %v1086_v42, %v839_v25 }
  0xe4   : > { %735 = vrot.lane.b32.xlu0 %v2435_v27, %s2092_s4  ;;  %v1121_v56 = vsel %vm1109_vm8, %v1088_v55, %v841_v31  ;;  %v756_v31 = vrot.slane %v754_v24, 1 }
  0xe5   : > { %737 = vrot.lane.b32.xlu1 %v2480_v11, %s2092_s4 }
  0xe6   : > { %v886_v36 = vpop.permute.xlu0 %885  ;;  %v757_v38 = vsel %vm400_vm1, %v752_v3, %v756_v31 }
  0xe7   : > { %v888_v40 = vpop.permute.xlu1 %887  ;;  %v1152_v50 = vsel %vm1142_vm9, %v1119_v44, %v886_v36  ;;  %v791_v36 = vrot.slane %v2009_v17, 1 }
  0xe8   : > { %782 = vrot.lane.b32.xlu0 %v568_v4, %s2096_s8  ;;  %v1154_v57 = vsel %vm1142_vm9, %v1121_v56, %v888_v40  ;;  %v592_v4 = vsel %vm400_vm1, %v587_v59, %v591_v61  ;;  %v868_v40 = vshll.u32 %v2010_v32, 16 }
  0xe9   : > { %784 = vrot.lane.b32.xlu1 %v580_v37, %s2096_s8  ;;  %v792_v46 = vsel %vm625_vm0, %v790_v35, %v791_v36 }
  0xea   : > { %v921_v30 = vpop.permute.xlu0 %920  ;;  %v870_v51 = vrot.slane %v868_v40, 1 }
  0xeb   : > { %v606_v53 = vpop.permute.xlu1 %605  ;;  %v1185_v54 = vsel %vm1175_vm10, %v1152_v50, %v921_v30 }
  0xec   : > { %817 = vrot.lane.b32.xlu0 %v667_v13, %s2093_s5  ;;  %1876 = vmatprep.mubr.msk.bf16.mxu0 %vm1228_vm11, %v1185_v54  ;;  %v958_v33 = vsel %vm944_vm3, %v2288_v14, %v606_v53  ;;  %v871_v59 = vor.u32 %v870_v51, %v866_v47 }
  0xed   : > { %819 = vrot.lane.b32.xlu1 %v670_v45, %s2093_s5 }
  0xee   : > { %v923_v58 = vpop.permute.xlu0 %922 }
  0xef   : > { %v608_v62 = vpop.permute.xlu1 %607  ;;  %v1187_v63 = vsel %vm1175_vm10, %v1154_v57, %v923_v58 }
  0xf0   : > { %854 = vrot.lane.b32.xlu0 %v2480_v11, %s2097_s11  ;;  %1877 = vmatmul.mubr.msk.bf16.gmra.mrb[8].mxu0 %vm1228_vm11, %v1187_v63  ;;  %v960_v42 = vsel %vm944_vm3, %v2301_v23, %v608_v62  ;;  %v873_v23 = vshll.u32 %v2011_v49, 16 }
  0xf1   : > { %856 = vrot.lane.b32.xlu1 %v2493_v29, %s2097_s11 }
  0xf2   : > { %v687_v2 = vpop.permute.xlu0 %686  ;;  %v875_v61 = vrot.slane %v873_v23, 1 }
  0xf3   : > { %v689_v5 = vpop.permute.xlu1 %688  ;;  %v991_v34 = vsel %vm977_vm4, %v958_v33, %v687_v2 }
  0xf4   : > { %901 = vrot.lane.b32.xlu0 %v580_v37, %s2098_s21  ;;  %v993_v44 = vsel %vm977_vm4, %v960_v42, %v689_v5  ;;  %v909_v5 = vrot.slane %v2010_v32, 1 }
  0xf5   : > { %903 = vrot.lane.b32.xlu1 %v592_v4, %s2098_s21 }
  0xf6   : > { %v724_v8 = vpop.permute.xlu0 %723 }
  0xf7   : > { %v726_v13 = vpop.permute.xlu1 %725 }
  0xf8   : > { %936 = vrot.lane.b32.xlu0 %v670_v45, %s2099_s28  ;;  %v1026_v50 = vsel %vm1010_vm5, %v993_v44, %v726_v13  ;;  %v911_v13 = vsel %vm625_vm0, %v909_v5, %v910_v6 }
  0xf9   : > { %621 = vrot.lane.b32.xlu1 %v580_v37, %s2095_s7  ;;  %v1024_v37 = vsel %vm1010_vm5, %v991_v34, %v724_v8 }
  0xfa   : > { %v771_v16 = vpop.permute.xlu0 %770 }
  0xfb   : > { %v773_v19 = vpop.permute.xlu1 %772  ;;  %v1057_v14 = vsel %vm1043_vm6, %v1024_v37, %v771_v16 }
  0xfc   : > { %938 = vrot.lane.b32.xlu0 %v673_v15, %s2099_s28  ;;  %v1059_v52 = vsel %vm1043_vm6, %v1026_v50, %v773_v19 }
  0xfd   : > { %623 = vrot.lane.b32.xlu1 %v592_v4, %s2095_s7 }
  0xfe   : > { %v806_v20 = vpop.permute.xlu0 %805 }
  0xff   : > { %v808_v25 = vpop.permute.xlu1 %807  ;;  %v1090_v43 = vsel %vm1076_vm7, %v1057_v14, %v806_v20 }
 0x100   : > { %702 = vrot.lane.b32.xlu0 %v670_v45, %s2094_s6  ;;  %v1092_v55 = vsel %vm1076_vm7, %v1059_v52, %v808_v25 }
 0x101   : > { %704 = vrot.lane.b32.xlu1 %v673_v15, %s2094_s6  ;;  %s1779_s6 = sshll.u32 %s188_s26, 1 }
 0x102   : > { %v843_v26 = vpop.permute.xlu0 %842  ;;  %s2745_s7 = scalar_lea.vmem [#allocation2], %s1779_s6 }
 0x103   : > { %v845_v1 = vpop.permute.xlu1 %844  ;;  %v1123_v45 = vsel %vm1109_vm8, %v1090_v43, %v843_v26  ;;  %s1663_s9 = sshll.u32 %s2745_s7, 4  ;;  %s2822_s9 = int_to_ptr.vmem [resolvable:$true] %s1663_s9 }
 0x104   : > { %739 = vrot.lane.b32.xlu0 %v2493_v29, %s2092_s4  ;;  %v1125_v56 = vsel %vm1109_vm8, %v1092_v55, %v845_v1 }
 0x105   : > { %741 = vrot.lane.b32.xlu1 %v2538_v12, %s2092_s4 }
 0x106   : > { %v890_v0 = vpop.permute.xlu0 %889 }
 0x107   : > { %v892_v41 = vpop.permute.xlu1 %891  ;;  %v1156_v30 = vsel %vm1142_vm9, %v1123_v45, %v890_v0 }
 0x108   : > { %786 = vrot.lane.b32.xlu0 %v592_v4, %s2096_s8  ;;  %v1158_v57 = vsel %vm1142_vm9, %v1125_v56, %v892_v41  ;;  %v876_v4 = vsel %vm400_vm1, %v871_v59, %v875_v61 }
 0x109   : > { %788 = vrot.lane.b32.xlu1 %v757_v38, %s2096_s8  ;;  %s1839_s8 = sshll.u32 %s2082_s15, 5  ;;  %s2101_s15 = smov [#allocation2]  }
 0x10a   : > { %v925_v60 = vpop.permute.xlu0 %924  ;;  %s2820_s18 = scalar_lea.hbm %s2873_s3, %s1839_s8  ;;  %s2016_s23 = sshll.u32 %s2101_s15, 4  ;;  %s2017_s23 = int_to_ptr.vmem [resolvable:$false] %s2016_s23 }
 0x10b   : > { %v610_v53 = vpop.permute.xlu1 %609  ;;  %v1189_v54 = vsel %vm1175_vm10, %v1156_v30, %v925_v60  ;;  %s2018_s27 = scalar_lea.vmem %s2017_s23, 64  ;;  %p2019_p1 = scmp.lt.s32.totalorder %s2822_s9, %s2017_s23 }
 0x10c   : > { %821 = vrot.lane.b32.xlu0 %v673_v15, %s2093_s5  ;;  %1880 = vmatprep.mubr.msk.bf16.mxu0 %vm1228_vm11, %v1189_v54  ;;  %v962_v21 = vsel %vm944_vm3, %v2326_v39, %v610_v53 }
 0x10d   : > { %823 = vrot.lane.b32.xlu1 %v792_v46, %s2093_s5  ;;  %s2656_s5 = scalar_lea.vmem %s2872_s2, %s1842_s29 }
 0x10e   : > { %v927_v58 = vpop.permute.xlu0 %926 }
 0x10f   : > { %v612_v62 = vpop.permute.xlu1 %611  ;;  %v1191_v63 = vsel %vm1175_vm10, %v1158_v57, %v927_v58 }
 0x110   : > { %858 = vrot.lane.b32.xlu0 %v2538_v12, %s2097_s11  ;;  %1881 = vmatmul.mubr.msk.bf16.gmra.mrb[12].mxu0 %vm1228_vm11, %v1191_v63  ;;  %v964_v31 = vsel %vm944_vm3, %v2339_v48, %v612_v62 }
 0x111   : > { %860 = vrot.lane.b32.xlu1 %v2010_v32, %s2097_s11 }
 0x112   : > { %v691_v2 = vpop.permute.xlu0 %690 }
 0x113   : > { %v693_v7 = vpop.permute.xlu1 %692  ;;  %v995_v22 = vsel %vm977_vm4, %v962_v21, %v691_v2 }
 0x114   : > { %905 = vrot.lane.b32.xlu0 %v757_v38, %s2098_s21  ;;  %v997_v1 = vsel %vm977_vm4, %v964_v31, %v693_v7 }
 0x115   : > { %907 = vrot.lane.b32.xlu1 %v876_v4, %s2098_s21  ;;  %s2012_s21 = scalar_lea.vmem %s2822_s9, 32 }
 0x116   : > { %v728_v8 = vpop.permute.xlu0 %727  ;;  %p2013_p12 = scmp.ne.s32.totalorder %s2822_s9, %s2012_s21  ;;  %p2020_p2 = scmp.lt.s32.totalorder %s2018_s27, %s2012_s21 }
 0x117   : > { %v730_v15 = vpop.permute.xlu1 %729  ;;  %v1028_v24 = vsel %vm1010_vm5, %v995_v22, %v728_v8 }
 0x118   : > { %940 = vrot.lane.b32.xlu0 %v792_v46, %s2099_s28  ;;  %v1030_v34 = vsel %vm1010_vm5, %v997_v1, %v730_v15  ;;  %p2014_p13 = pnand %p2013_p12, %p2162_p4  ;;  %p2021_p3 = por %p2020_p2, %p2019_p1 }
 0x119   : > { %942 = vrot.lane.b32.xlu1 %v911_v13, %s2099_s28 }
 0x11a   : > { %v775_v12 = vpop.permute.xlu0 %774  ;;  %p2015_p0 = pneg %p2014_p13 }
 0x11b   : > { %v777_v16 = vpop.permute.xlu1 %776  ;;  %v1061_v26 = vsel %vm1043_vm6, %v1028_v24, %v775_v12 }
 0x11c   : > { %v1063_v36 = vsel %vm1043_vm6, %v1030_v34, %v777_v16  ;;  %p2022_p5 = pnand %p2021_p3, %p2015_p0 }
 0x11e   : > { %v810_v17 = vpop.permute.xlu0 %809 }
 0x11f   : > { %v812_v18 = vpop.permute.xlu1 %811  ;;  %v1094_v32 = vsel %vm1076_vm7, %v1061_v26, %v810_v17 }
 0x120   : > { %v1096_v38 = vsel %vm1076_vm7, %v1063_v36, %v812_v18 }
 0x122   : > { %v847_v19 = vpop.permute.xlu0 %846 }
 0x123   : > { %v849_v20 = vpop.permute.xlu1 %848  ;;  %v1127_v33 = vsel %vm1109_vm8, %v1094_v32, %v847_v19 }
 0x124   : > { %v1129_v48 = vsel %vm1109_vm8, %v1096_v38, %v849_v20 }
 0x126   : > { %v894_v25 = vpop.permute.xlu0 %893 }
 0x127   : > { %v896_v3 = vpop.permute.xlu1 %895  ;;  %v1160_v39 = vsel %vm1142_vm9, %v1127_v33, %v894_v25 }
 0x128   : > { %v1162_v49 = vsel %vm1142_vm9, %v1129_v48, %v896_v3 }
 0x12a   : > { %v929_v35 = vpop.permute.xlu0 %928 }
 0x12b   : > { %v614_v37 = vpop.permute.xlu1 %613  ;;  %v1193_v0 = vsel %vm1175_vm10, %v1160_v39, %v929_v35 }
 0x12c   : > { %1884 = vmatprep.mubr.msk.bf16.mxu1 %vm1228_vm11, %v1193_v0  ;;  %v966_v23 = vsel %vm944_vm3, %v2364_v9, %v614_v37 }
 0x12e   : > { %v931_v40 = vpop.permute.xlu0 %930 }
 0x12f   : > { %v616_v14 = vpop.permute.xlu1 %615  ;;  %v1195_v41 = vsel %vm1175_vm10, %v1162_v49, %v931_v40 }
 0x130   : > { %1885 = vmatmul.mubr.msk.bf16.vlgmr.msra.gmra.mrb[0].mxu1 %vm1228_vm11, %v1195_v41  ;;  %v968_v57 = vsel %vm944_vm3, %v2382_v28, %v616_v14 }
 0x132   : > { %v695_v42 = vpop.permute.xlu0 %694 }
 0x133   : > { %v697_v43 = vpop.permute.xlu1 %696  ;;  %v999_v52 = vsel %vm977_vm4, %v966_v23, %v695_v42 }
 0x134   : > { %v1001_v59 = vsel %vm977_vm4, %v968_v57, %v697_v43 }
 0x136   : > { %v732_v44 = vpop.permute.xlu0 %731 }
 0x137   : > { %v734_v45 = vpop.permute.xlu1 %733  ;;  %v1032_v53 = vsel %vm1010_vm5, %v999_v52, %v732_v44 }
 0x138   : > { %v1034_v62 = vsel %vm1010_vm5, %v1001_v59, %v734_v45 }
 0x13a   : > { %v779_v46 = vpop.permute.xlu0 %778 }
 0x13b   : > { %v781_v47 = vpop.permute.xlu1 %780  ;;  %v1065_v55 = vsel %vm1043_vm6, %v1032_v53, %v779_v46 }
 0x13c   : > { %v1067_v2 = vsel %vm1043_vm6, %v1034_v62, %v781_v47 }
 0x13e   : > { %v814_v50 = vpop.permute.xlu0 %813 }
 0x13f   : > { %v816_v30 = vpop.permute.xlu1 %815  ;;  %v1098_v58 = vsel %vm1076_vm7, %v1065_v55, %v814_v50 }
 0x140   : > { %v1100_v6 = vsel %vm1076_vm7, %v1067_v2, %v816_v30 }
 0x142   : > { %v851_v60 = vpop.permute.xlu0 %850 }
 0x143   : > { %v853_v51 = vpop.permute.xlu1 %852  ;;  %v1131_v61 = vsel %vm1109_vm8, %v1098_v58, %v851_v60 }
 0x144   : > { %v1133_v28 = vsel %vm1109_vm8, %v1100_v6, %v853_v51 }
 0x146   : > { %v898_v54 = vpop.permute.xlu0 %897 }
 0x147   : > { %v900_v56 = vpop.permute.xlu1 %899  ;;  %v1164_v9 = vsel %vm1142_vm9, %v1131_v61, %v898_v54 }
 0x148   : > { %v1166_v7 = vsel %vm1142_vm9, %v1133_v28, %v900_v56 }
 0x14a   : > { %v933_v63 = vpop.permute.xlu0 %932 }
 0x14b   : > { %v618_v4 = vpop.permute.xlu1 %617  ;;  %v1197_v5 = vsel %vm1175_vm10, %v1164_v9, %v933_v63 }
 0x14c   : > { %1888 = vmatprep.mubr.msk.bf16.mxu1 %vm1228_vm11, %v1197_v5  ;;  %v970_v26 = vsel %vm944_vm3, %v2422_v10, %v618_v4 }
 0x14e   : > { %v935_v8 = vpop.permute.xlu0 %934 }
 0x14f   : > { %v620_v13 = vpop.permute.xlu1 %619  ;;  %v1199_v15 = vsel %vm1175_vm10, %v1166_v7, %v935_v8 }
 0x150   : > { %1889 = vmatmul.mubr.msk.bf16.gmra.mrb[4].mxu1 %vm1228_vm11, %v1199_v15  ;;  %v972_v34 = vsel %vm944_vm3, %v2435_v27, %v620_v13 }
 0x152   : > { %v699_v12 = vpop.permute.xlu0 %698 }
 0x153   : > { %v701_v16 = vpop.permute.xlu1 %700  ;;  %v1003_v3 = vsel %vm977_vm4, %v970_v26, %v699_v12 }
 0x154   : > { %v1005_v35 = vsel %vm977_vm4, %v972_v34, %v701_v16 }
 0x156   : > { %v736_v17 = vpop.permute.xlu0 %735 }
 0x157   : > { %v738_v18 = vpop.permute.xlu1 %737  ;;  %v1036_v31 = vsel %vm1010_vm5, %v1003_v3, %v736_v17 }
 0x158   : > { %v1038_v37 = vsel %vm1010_vm5, %v1005_v35, %v738_v18 }
 0x15a   : > { %v783_v19 = vpop.permute.xlu0 %782 }
 0x15b   : > { %v785_v20 = vpop.permute.xlu1 %784  ;;  %v1069_v1 = vsel %vm1043_vm6, %v1036_v31, %v783_v19 }
 0x15c   : > { %v1071_v38 = vsel %vm1043_vm6, %v1038_v37, %v785_v20 }
 0x15e   : > { %v818_v21 = vpop.permute.xlu0 %817 }
 0x15f   : > { %v820_v22 = vpop.permute.xlu1 %819  ;;  %v1102_v39 = vsel %vm1076_vm7, %v1069_v1, %v818_v21 }
 0x160   : > { %v1104_v40 = vsel %vm1076_vm7, %v1071_v38, %v820_v22 }
 0x162   : > { %v855_v24 = vpop.permute.xlu0 %854 }
 0x163   : > { %v857_v25 = vpop.permute.xlu1 %856  ;;  %v1135_v36 = vsel %vm1109_vm8, %v1102_v39, %v855_v24 }
 0x164   : > { %v1137_v27 = vsel %vm1109_vm8, %v1104_v40, %v857_v25 }
 0x166   : > { %v902_v32 = vpop.permute.xlu0 %901 }
 0x167   : > { %v904_v33 = vpop.permute.xlu1 %903  ;;  %v1168_v10 = vsel %vm1142_vm9, %v1135_v36, %v902_v32 }
 0x168   : > { %v1170_v14 = vsel %vm1142_vm9, %v1137_v27, %v904_v33 }
 0x16a   : > { %v937_v0 = vpop.permute.xlu0 %936 }
 0x16b   : > { %v622_v48 = vpop.permute.xlu1 %621  ;;  %v1201_v49 = vsel %vm1175_vm10, %v1168_v10, %v937_v0 }
 0x16c   : > { %1892 = vmatprep.mubr.msk.bf16.mxu1 %vm1228_vm11, %v1201_v49  ;;  %v974_v23 = vsel %vm944_vm3, %v2480_v11, %v622_v48 }
 0x16e   : > { %v939_v41 = vpop.permute.xlu0 %938 }
 0x16f   : > { %v624_v42 = vpop.permute.xlu1 %623  ;;  %v1203_v43 = vsel %vm1175_vm10, %v1170_v14, %v939_v41 }
 0x170   : > { %1893 = vmatmul.mubr.msk.bf16.gmra.mrb[8].mxu1 %vm1228_vm11, %v1203_v43  ;;  %v976_v53 = vsel %vm944_vm3, %v2493_v29, %v624_v42 }
 0x172   : > { %v703_v44 = vpop.permute.xlu0 %702 }
 0x173   : > { %v705_v45 = vpop.permute.xlu1 %704  ;;  %v1007_v54 = vsel %vm977_vm4, %v974_v23, %v703_v44 }
 0x174   : > { %v1009_v57 = vsel %vm977_vm4, %v976_v53, %v705_v45 }
 0x176   : > { %v740_v46 = vpop.permute.xlu0 %739 }
 0x177   : > { %v742_v47 = vpop.permute.xlu1 %741  ;;  %v1040_v58 = vsel %vm1010_vm5, %v1007_v54, %v740_v46 }
 0x178   : > { %v1042_v61 = vsel %vm1010_vm5, %v1009_v57, %v742_v47 }
 0x17a   : > { %v787_v50 = vpop.permute.xlu0 %786 }
 0x17b   : > { %v789_v30 = vpop.permute.xlu1 %788  ;;  %v1073_v11 = vsel %vm1043_vm6, %v1040_v58, %v787_v50 }
 0x17c   : > { %v1075_v9 = vsel %vm1043_vm6, %v1042_v61, %v789_v30 }
 0x17e   : > { %v822_v60 = vpop.permute.xlu0 %821 }
 0x17f   : > { %v824_v51 = vpop.permute.xlu1 %823  ;;  %v1106_v63 = vsel %vm1076_vm7, %v1073_v11, %v822_v60 }
 0x180   : > { %v1108_v13 = vsel %vm1076_vm7, %v1075_v9, %v824_v51 }
 0x182   : > { %v859_v52 = vpop.permute.xlu0 %858 }
 0x183   : > { %v861_v55 = vpop.permute.xlu1 %860  ;;  %v1870_v56 = vpop.f32.mrb[0].mxu0  ;;  %v1139_v15 = vsel %vm1109_vm8, %v1106_v63, %v859_v52 }
 0x184   : > { %1428 = vst.msk [vmem:[%s2656_s5 + $0x10] sm:$0xff] %vm977_vm4, %v1870_v56  ;;  %v1299_v59 = vpop.f32.mrb[1].mxu0  ;;  %v1534_v5 = vmul.f32 %v1870_v56, %v1870_v56  ;;  %v1462_v16 = vsel %vm977_vm4, %v1870_v56, 0.0  ;;  %v1141_v20 = vsel %vm1109_vm8, %v1108_v13, %v861_v55 }
 0x185   : > { %1426 = vst.msk [vmem:[%s2656_s5] sm:$0xff] %vm977_vm4, %v1299_v59  ;;  %v1532_v62 = vmul.f32 %v1299_v59, %v1299_v59  ;;  %v1871_v29 = vpop.f32.mrb[2].mxu0  ;;  %v1459_v6 = vsel %vm977_vm4, %v1299_v59, 0.0 }
 0x186   : > { %1429 = vst.msk [vmem:[%s2656_s5 + $0x18] sm:$0xff] %vm977_vm4, %v1871_v29  ;;  %v1302_v2 = vpop.f32.mrb[3].mxu0  ;;  %v906_v4 = vpop.permute.xlu0 %905  ;;  %v1535_v18 = vmul.f32 %v1871_v29, %v1871_v29  ;;  %v1567_v26 = vsel %vm977_vm4, %v1534_v5, 0.0  ;;  %v1464_v3 = vsel %vm977_vm4, %v1871_v29, 0.0 }
 0x187   : > { %v908_v28 = vpop.permute.xlu1 %907  ;;  %1427 = vst.msk [vmem:[%s2656_s5 + $0x8] sm:$0xff] %vm977_vm4, %v1302_v2  ;;  %v1460_v7 = vsel %vm977_vm4, %v1302_v2, 0.0  ;;  %v1533_v8 = vmul.f32 %v1302_v2, %v1302_v2  ;;  %v1564_v17 = vsel %vm977_vm4, %v1532_v62, 0.0  ;;  %v1172_v24 = vsel %vm1142_vm9, %v1139_v15, %v906_v4 }
 0x188   : > { %v1461_v12 = vadd.f32 %v1460_v7, %v1459_v6  ;;  %v1174_v31 = vsel %vm1142_vm9, %v1141_v20, %v908_v28  ;;  %v1569_v35 = vsel %vm977_vm4, %v1535_v18, 0.0 }
 0x189   : > { %v1565_v19 = vsel %vm977_vm4, %v1533_v8, 0.0 }
 0x18a   : > { %v1463_v21 = vadd.f32 %v1462_v16, %v1461_v12  ;;  %v1566_v22 = vadd.f32 %v1565_v19, %v1564_v17  ;;  %v941_v25 = vpop.permute.xlu0 %940 }
 0x18b   : > { %v943_v32 = vpop.permute.xlu1 %942  ;;  %v1205_v1 = vsel %vm1175_vm10, %v1172_v24, %v941_v25 }
 0x18c   : > { %v1568_v33 = vadd.f32 %v1567_v26, %v1566_v22  ;;  %v1207_v34 = vsel %vm1175_vm10, %v1174_v31, %v943_v32  ;;  %1896 = vmatprep.mubr.msk.bf16.mxu1 %vm1228_vm11, %v1205_v1  ;;  %v1465_v39 = vadd.f32 %v1464_v3, %v1463_v21 }
 0x18d   : > { %1897 = vmatmul.mubr.msk.bf16.gmra.mrb[12].mxu1 %vm1228_vm11, %v1207_v34 }
 0x18e   : > { %v1570_v36 = vadd.f32 %v1569_v35, %v1568_v33 }
 0x1a3   : > { %v1874_v37 = vpop.f32.mrb[4].mxu0 }
 0x1a4   : > { %1432 = vst.msk [vmem:[%s2656_s5 + $0x30] sm:$0xff] %vm977_vm4, %v1874_v37  ;;  %v1315_v10 = vpop.f32.mrb[5].mxu0  ;;  %v1538_v27 = vmul.f32 %v1874_v37, %v1874_v37  ;;  %v1470_v45 = vsel %vm977_vm4, %v1874_v37, 0.0 }
 0x1a5   : > { %1430 = vst.msk [vmem:[%s2656_s5 + $0x20] sm:$0xff] %vm977_vm4, %v1315_v10  ;;  %v1466_v0 = vsel %vm977_vm4, %v1315_v10, 0.0  ;;  %v1536_v38 = vmul.f32 %v1315_v10, %v1315_v10  ;;  %v1875_v48 = vpop.f32.mrb[6].mxu0 }
 0x1a6   : > { %v1467_v49 = vadd.f32 %v1466_v0, %v1465_v39  ;;  %1433 = vst.msk [vmem:[%s2656_s5 + $0x38] sm:$0xff] %vm977_vm4, %v1875_v48  ;;  %v1318_v40 = vpop.f32.mrb[7].mxu0  ;;  %v1539_v46 = vmul.f32 %v1875_v48, %v1875_v48  ;;  %v1575_v60 = vsel %vm977_vm4, %v1538_v27, 0.0  ;;  %v1472_v51 = vsel %vm977_vm4, %v1875_v48, 0.0 }
 0x1a7   : > { %v1571_v14 = vsel %vm977_vm4, %v1536_v38, 0.0  ;;  %1431 = vst.msk [vmem:[%s2656_s5 + $0x28] sm:$0xff] %vm977_vm4, %v1318_v40  ;;  %v1468_v41 = vsel %vm977_vm4, %v1318_v40, 0.0  ;;  %v1537_v42 = vmul.f32 %v1318_v40, %v1318_v40 }
 0x1a8   : > { %v1572_v43 = vadd.f32 %v1571_v14, %v1570_v36  ;;  %v1469_v44 = vadd.f32 %v1468_v41, %v1467_v49  ;;  %v1577_v53 = vsel %vm977_vm4, %v1539_v46, 0.0  ;;  %v2100_v14 = vmov 0.0  }
 0x1a9   : > { %v1573_v47 = vsel %vm977_vm4, %v1537_v42, 0.0  ;;  %213 = vst.msk [vmem:[%s2745_s7] sm:$0x3] %vm212_vm12, %v2100_v14 }
 0x1aa   : > { %v1471_v50 = vadd.f32 %v1470_v45, %v1469_v44  ;;  %v1574_v30 = vadd.f32 %v1573_v47, %v1572_v43 }
 0x1ac   : > { %v1576_v23 = vadd.f32 %v1575_v60, %v1574_v30  ;;  %v1473_v52 = vadd.f32 %v1472_v51, %v1471_v50 }
 0x1ae   : > { %v1578_v54 = vadd.f32 %v1577_v53, %v1576_v23 }
 0x1c3   : > { %v1878_v55 = vpop.f32.mrb[8].mxu0 }
 0x1c4   : > { %1436 = vst.msk [vmem:[%s2656_s5 + $0x50] sm:$0xff] %vm977_vm4, %v1878_v55  ;;  %v1331_v56 = vpop.f32.mrb[9].mxu0  ;;  %v1542_v62 = vmul.f32 %v1878_v55, %v1878_v55  ;;  %v1478_v5 = vsel %vm977_vm4, %v1878_v55, 0.0 }
 0x1c5   : > { %1434 = vst.msk [vmem:[%s2656_s5 + $0x40] sm:$0xff] %vm977_vm4, %v1331_v56  ;;  %v1474_v57 = vsel %vm977_vm4, %v1331_v56, 0.0  ;;  %v1540_v58 = vmul.f32 %v1331_v56, %v1331_v56  ;;  %v1879_v59 = vpop.f32.mrb[10].mxu0 }
 0x1c6   : > { %v1475_v61 = vadd.f32 %v1474_v57, %v1473_v52  ;;  %1437 = vst.msk [vmem:[%s2656_s5 + $0x58] sm:$0xff] %vm977_vm4, %v1879_v59  ;;  %v1334_v11 = vpop.f32.mrb[11].mxu0  ;;  %v1543_v6 = vmul.f32 %v1879_v59, %v1879_v59  ;;  %v1583_v13 = vsel %vm977_vm4, %v1542_v62, 0.0  ;;  %v1480_v15 = vsel %vm977_vm4, %v1879_v59, 0.0 }
 0x1c7   : > { %v1579_v29 = vsel %vm977_vm4, %v1540_v58, 0.0  ;;  %1435 = vst.msk [vmem:[%s2656_s5 + $0x48] sm:$0xff] %vm977_vm4, %v1334_v11  ;;  %v1476_v9 = vsel %vm977_vm4, %v1334_v11, 0.0  ;;  %v1541_v63 = vmul.f32 %v1334_v11, %v1334_v11 }
 0x1c8   : > { %v1580_v2 = vadd.f32 %v1579_v29, %v1578_v54  ;;  %v1477_v4 = vadd.f32 %v1476_v9, %v1475_v61  ;;  %v1585_v17 = vsel %vm977_vm4, %v1543_v6, 0.0 }
 0x1c9   : > { %v1581_v28 = vsel %vm977_vm4, %v1541_v63, 0.0 }
 0x1ca   : > { %v1479_v7 = vadd.f32 %v1478_v5, %v1477_v4  ;;  %v1582_v8 = vadd.f32 %v1581_v28, %v1580_v2 }
 0x1cc   : > { %v1584_v12 = vadd.f32 %v1583_v13, %v1582_v8  ;;  %v1481_v16 = vadd.f32 %v1480_v15, %v1479_v7 }
 0x1ce   : > { %v1586_v18 = vadd.f32 %v1585_v17, %v1584_v12 }
 0x1e3   : > { %v1882_v19 = vpop.f32.mrb[12].mxu0 }
 0x1e4   : > { %1440 = vst.msk [vmem:[%s2656_s5 + $0x70] sm:$0xff] %vm977_vm4, %v1882_v19  ;;  %v1347_v20 = vpop.f32.mrb[13].mxu0  ;;  %v1546_v3 = vmul.f32 %v1882_v19, %v1882_v19  ;;  %v1486_v39 = vsel %vm977_vm4, %v1882_v19, 0.0 }
 0x1e5   : > { %1438 = vst.msk [vmem:[%s2656_s5 + $0x60] sm:$0xff] %vm977_vm4, %v1347_v20  ;;  %v1482_v21 = vsel %vm977_vm4, %v1347_v20, 0.0  ;;  %v1544_v22 = vmul.f32 %v1347_v20, %v1347_v20  ;;  %v1883_v24 = vpop.f32.mrb[14].mxu0 }
 0x1e6   : > { %v1483_v25 = vadd.f32 %v1482_v21, %v1481_v16  ;;  %1441 = vst.msk [vmem:[%s2656_s5 + $0x78] sm:$0xff] %vm977_vm4, %v1883_v24  ;;  %v1350_v26 = vpop.f32.mrb[15].mxu0  ;;  %v1547_v35 = vmul.f32 %v1883_v24, %v1883_v24  ;;  %v1591_v0 = vsel %vm977_vm4, %v1546_v3, 0.0  ;;  %v1488_v38 = vsel %vm977_vm4, %v1883_v24, 0.0 }
 0x1e7   : > { %v1587_v31 = vsel %vm977_vm4, %v1544_v22, 0.0  ;;  %1439 = vst.msk [vmem:[%s2656_s5 + $0x68] sm:$0xff] %vm977_vm4, %v1350_v26  ;;  %v1484_v32 = vsel %vm977_vm4, %v1350_v26, 0.0  ;;  %v1545_v1 = vmul.f32 %v1350_v26, %v1350_v26 }
 0x1e8   : > { %v1588_v33 = vadd.f32 %v1587_v31, %v1586_v18  ;;  %v1485_v34 = vadd.f32 %v1484_v32, %v1483_v25  ;;  %v1593_v40 = vsel %vm977_vm4, %v1547_v35, 0.0 }
 0x1e9   : > { %v1589_v36 = vsel %vm977_vm4, %v1545_v1, 0.0 }
 0x1ea   : > { %v1487_v37 = vadd.f32 %v1486_v39, %v1485_v34  ;;  %v1590_v10 = vadd.f32 %v1589_v36, %v1588_v33 }
 0x1ec   : > { %v1592_v48 = vadd.f32 %v1591_v0, %v1590_v10  ;;  %v1489_v49 = vadd.f32 %v1488_v38, %v1487_v37 }
 0x1ee   : > { %v1594_v27 = vadd.f32 %v1593_v40, %v1592_v48 }
 0x203   : > { %v1886_v41 = vpop.f32.mrb[0].mxu1 }
 0x204   : > { %1444 = vst.msk [vmem:[%s2656_s5 + $0x90] sm:$0xff] %vm977_vm4, %v1886_v41  ;;  %v1363_v42 = vpop.f32.mrb[1].mxu1  ;;  %v1550_v50 = vmul.f32 %v1886_v41, %v1886_v41  ;;  %v1494_v53 = vsel %vm977_vm4, %v1886_v41, 0.0 }
 0x205   : > { %1442 = vst.msk [vmem:[%s2656_s5 + $0x80] sm:$0xff] %vm977_vm4, %v1363_v42  ;;  %v1490_v43 = vsel %vm977_vm4, %v1363_v42, 0.0  ;;  %v1548_v44 = vmul.f32 %v1363_v42, %v1363_v42  ;;  %v1887_v45 = vpop.f32.mrb[2].mxu1 }
 0x206   : > { %v1491_v46 = vadd.f32 %v1490_v43, %v1489_v49  ;;  %1445 = vst.msk [vmem:[%s2656_s5 + $0x98] sm:$0xff] %vm977_vm4, %v1887_v45  ;;  %v1366_v47 = vpop.f32.mrb[3].mxu1  ;;  %v1551_v54 = vmul.f32 %v1887_v45, %v1887_v45  ;;  %v1599_v58 = vsel %vm977_vm4, %v1550_v50, 0.0  ;;  %v1496_v59 = vsel %vm977_vm4, %v1887_v45, 0.0 }
 0x207   : > { %v1595_v30 = vsel %vm977_vm4, %v1548_v44, 0.0  ;;  %1443 = vst.msk [vmem:[%s2656_s5 + $0x88] sm:$0xff] %vm977_vm4, %v1366_v47  ;;  %v1492_v60 = vsel %vm977_vm4, %v1366_v47, 0.0  ;;  %v1549_v51 = vmul.f32 %v1366_v47, %v1366_v47 }
 0x208   : > { %v1596_v23 = vadd.f32 %v1595_v30, %v1594_v27  ;;  %v1493_v52 = vadd.f32 %v1492_v60, %v1491_v46  ;;  %v1601_v62 = vsel %vm977_vm4, %v1551_v54, 0.0 }
 0x209   : > { %v1597_v55 = vsel %vm977_vm4, %v1549_v51, 0.0 }
 0x20a   : > { %v1495_v56 = vadd.f32 %v1494_v53, %v1493_v52  ;;  %v1598_v57 = vadd.f32 %v1597_v55, %v1596_v23 }
 0x20c   : > { %v1600_v61 = vadd.f32 %v1599_v58, %v1598_v57  ;;  %v1497_v11 = vadd.f32 %v1496_v59, %v1495_v56 }
 0x20e   : > { %v1602_v29 = vadd.f32 %v1601_v62, %v1600_v61 }
 0x223   : > { %v1890_v9 = vpop.f32.mrb[4].mxu1 }
 0x224   : > { %1448 = vst.msk [vmem:[%s2656_s5 + $0xb0] sm:$0xff] %vm977_vm4, %v1890_v9  ;;  %v1379_v63 = vpop.f32.mrb[5].mxu1  ;;  %v1554_v7 = vmul.f32 %v1890_v9, %v1890_v9  ;;  %v1502_v17 = vsel %vm977_vm4, %v1890_v9, 0.0 }
 0x225   : > { %1446 = vst.msk [vmem:[%s2656_s5 + $0xa0] sm:$0xff] %vm977_vm4, %v1379_v63  ;;  %v1498_v2 = vsel %vm977_vm4, %v1379_v63, 0.0  ;;  %v1552_v4 = vmul.f32 %v1379_v63, %v1379_v63  ;;  %v1891_v5 = vpop.f32.mrb[6].mxu1 }
 0x226   : > { %v1499_v6 = vadd.f32 %v1498_v2, %v1497_v11  ;;  %1449 = vst.msk [vmem:[%s2656_s5 + $0xb8] sm:$0xff] %vm977_vm4, %v1891_v5  ;;  %v1382_v28 = vpop.f32.mrb[7].mxu1  ;;  %v1555_v18 = vmul.f32 %v1891_v5, %v1891_v5  ;;  %v1607_v22 = vsel %vm977_vm4, %v1554_v7, 0.0  ;;  %v1504_v24 = vsel %vm977_vm4, %v1891_v5, 0.0 }
 0x227   : > { %v1603_v8 = vsel %vm977_vm4, %v1552_v4, 0.0  ;;  %1447 = vst.msk [vmem:[%s2656_s5 + $0xa8] sm:$0xff] %vm977_vm4, %v1382_v28  ;;  %v1500_v13 = vsel %vm977_vm4, %v1382_v28, 0.0  ;;  %v1553_v15 = vmul.f32 %v1382_v28, %v1382_v28 }
 0x228   : > { %v1604_v12 = vadd.f32 %v1603_v8, %v1602_v29  ;;  %v1501_v16 = vadd.f32 %v1500_v13, %v1499_v6  ;;  %v1609_v3 = vsel %vm977_vm4, %v1555_v18, 0.0 }
 0x229   : > { %v1605_v19 = vsel %vm977_vm4, %v1553_v15, 0.0 }
 0x22a   : > { %v1503_v20 = vadd.f32 %v1502_v17, %v1501_v16  ;;  %v1606_v21 = vadd.f32 %v1605_v19, %v1604_v12 }
 0x22c   : > { %v1608_v25 = vadd.f32 %v1607_v22, %v1606_v21  ;;  %v1505_v26 = vadd.f32 %v1504_v24, %v1503_v20  ;;  %v1458_v21 = vld [vmem:[%s2745_s7] sm:$0x1] }
 0x22e   : > { %v1610_v31 = vadd.f32 %v1609_v3, %v1608_v25  ;;  %v1531_v25 = vld [vmem:[%s2745_s7 + $0x1] sm:$0x1] }
 0x243   : > { %v1894_v32 = vpop.f32.mrb[8].mxu1 }
 0x244   : > { %1452 = vst.msk [vmem:[%s2656_s5 + $0xd0] sm:$0xff] %vm977_vm4, %v1894_v32  ;;  %v1395_v1 = vpop.f32.mrb[9].mxu1  ;;  %v1558_v37 = vmul.f32 %v1894_v32, %v1894_v32  ;;  %v1510_v40 = vsel %vm977_vm4, %v1894_v32, 0.0 }
 0x245   : > { %1450 = vst.msk [vmem:[%s2656_s5 + $0xc0] sm:$0xff] %vm977_vm4, %v1395_v1  ;;  %v1506_v33 = vsel %vm977_vm4, %v1395_v1, 0.0  ;;  %v1556_v34 = vmul.f32 %v1395_v1, %v1395_v1  ;;  %v1895_v39 = vpop.f32.mrb[10].mxu1 }
 0x246   : > { %v1507_v35 = vadd.f32 %v1506_v33, %v1505_v26  ;;  %1453 = vst.msk [vmem:[%s2656_s5 + $0xd8] sm:$0xff] %vm977_vm4, %v1895_v39  ;;  %v1398_v36 = vpop.f32.mrb[11].mxu1  ;;  %v1559_v27 = vmul.f32 %v1895_v39, %v1895_v39  ;;  %v1615_v43 = vsel %vm977_vm4, %v1558_v37, 0.0  ;;  %v1512_v44 = vsel %vm977_vm4, %v1895_v39, 0.0 }
 0x247   : > { %v1611_v10 = vsel %vm977_vm4, %v1556_v34, 0.0  ;;  %1451 = vst.msk [vmem:[%s2656_s5 + $0xc8] sm:$0xff] %vm977_vm4, %v1398_v36  ;;  %v1508_v0 = vsel %vm977_vm4, %v1398_v36, 0.0  ;;  %v1557_v38 = vmul.f32 %v1398_v36, %v1398_v36 }
 0x248   : > { %v1612_v48 = vadd.f32 %v1611_v10, %v1610_v31  ;;  %v1509_v49 = vadd.f32 %v1508_v0, %v1507_v35  ;;  %v1617_v47 = vsel %vm977_vm4, %v1559_v27, 0.0 }
 0x249   : > { %v1613_v14 = vsel %vm977_vm4, %v1557_v38, 0.0 }
 0x24a   : > { %v1511_v41 = vadd.f32 %v1510_v40, %v1509_v49  ;;  %v1614_v42 = vadd.f32 %v1613_v14, %v1612_v48 }
 0x24c   : > { %v1616_v45 = vadd.f32 %v1615_v43, %v1614_v42  ;;  %v1513_v46 = vadd.f32 %v1512_v44, %v1511_v41 }
 0x24e   : > { %v1618_v50 = vadd.f32 %v1617_v47, %v1616_v45 }
 0x260   : > { %v1898_v30 = vpop.f32.mrb[12].mxu1 }
 0x261   : > { %1456 = vst.msk [vmem:[%s2656_s5 + $0xf0] sm:$0xff] %vm977_vm4, %v1898_v30  ;;  %v1411_v60 = vpop.f32.mrb[13].mxu1  ;;  %v1562_v55 = vmul.f32 %v1898_v30, %v1898_v30  ;;  %v1518_v11 = vsel %vm977_vm4, %v1898_v30, 0.0 }
 0x262   : > { %1454 = vst.msk [vmem:[%s2656_s5 + $0xe0] sm:$0xff] %vm977_vm4, %v1411_v60  ;;  %v1514_v51 = vsel %vm977_vm4, %v1411_v60, 0.0  ;;  %v1560_v23 = vmul.f32 %v1411_v60, %v1411_v60  ;;  %v1899_v52 = vpop.f32.mrb[14].mxu1 }
 0x263   : > { %v1515_v53 = vadd.f32 %v1514_v51, %v1513_v46  ;;  %1457 = vst.msk [vmem:[%s2656_s5 + $0xf8] sm:$0xff] %vm977_vm4, %v1899_v52  ;;  %v1414_v54 = vpop.f32.mrb[15].mxu1  ;;  %v1563_v62 = vmul.f32 %v1899_v52, %v1899_v52  ;;  %v1623_v2 = vsel %vm977_vm4, %v1562_v55, 0.0  ;;  %v1520_v4 = vsel %vm977_vm4, %v1899_v52, 0.0 }
 0x264   : > { %v1619_v56 = vsel %vm977_vm4, %v1560_v23, 0.0  ;;  %1455 = vst.msk [vmem:[%s2656_s5 + $0xe8] sm:$0xff] %vm977_vm4, %v1414_v54  ;;  %v1516_v57 = vsel %vm977_vm4, %v1414_v54, 0.0  ;;  %v1561_v58 = vmul.f32 %v1414_v54, %v1414_v54 }
 0x265   : > { %v1620_v59 = vadd.f32 %v1619_v56, %v1618_v50  ;;  %v1517_v61 = vadd.f32 %v1516_v57, %v1515_v53  ;;  %v1625_v28 = vsel %vm977_vm4, %v1563_v62, 0.0 }
 0x266   : > { %v1621_v29 = vsel %vm977_vm4, %v1561_v58, 0.0 }
 0x267   : > { %v1519_v9 = vadd.f32 %v1518_v11, %v1517_v61  ;;  %v1622_v63 = vadd.f32 %v1621_v29, %v1620_v59 }
 0x269   : > { %v1521_v5 = vadd.f32 %v1520_v4, %v1519_v9  ;;  %v1624_v6 = vadd.f32 %v1623_v2, %v1622_v63 }
 0x26b   : > { %v1522_v7 = vrot.slane %v1521_v5, 4  ;;  %v1626_v8 = vadd.f32 %v1625_v28, %v1624_v6 }
 0x26d   : > { %v1523_v13 = vadd.f32 %v1522_v7, %v1521_v5  ;;  %v1627_v15 = vrot.slane %v1626_v8, 4 }
 0x26f   : > { %v1524_v12 = vrot.slane %v1523_v13, 2  ;;  %v1628_v16 = vadd.f32 %v1627_v15, %v1626_v8 }
 0x271   : > { %v1525_v17 = vadd.f32 %v1524_v12, %v1523_v13  ;;  %v1629_v18 = vrot.slane %v1628_v16, 2 }
 0x273   : > { %v1526_v19 = vrot.slane %v1525_v17, 1  ;;  %v1630_v20 = vadd.f32 %v1629_v18, %v1628_v16 }
 0x275   : > { %v1527_v22 = vadd.f32 %v1526_v19, %v1525_v17  ;;  %v1631_v24 = vrot.slane %v1630_v20, 1 }
 0x277   : > { %v1632_v26 = vadd.f32 %v1631_v24, %v1630_v20  ;;  %v1528_v3 = vadd.f32 %v1527_v22, %v1458_v21 }
 0x279   : > { %1530 = vst.msk [vmem:[%s2745_s7] sm:$0x1] %vm1529_vm13, %v1528_v3  ;;  %v1633_v31 = vadd.f32 %v1632_v26, %v1531_v25 }
 0x27b   : > { %1634 = vst.msk [vmem:[%s2745_s7 + $0x1] sm:$0x1] %vm1529_vm13, %v1633_v31 }
 0x27c   : > { %2025 = shalt.err (!%p2022_p5)
}
 0x27d   : > { %s2026_s28 = scalar_lea.hbm %s2820_s18, 32  ;;  %s2030_s4 = scalar_lea.hbm %s2873_s3, 64 }
 0x27e   : > { %p2027_p6 = scmp.ne.s32.totalorder %s2820_s18, %s2026_s28  ;;  %p2031_p10 = scmp.lt.u32.totalorder %s2820_s18, %s2873_s3 }
 0x27f   : > { %p2032_p11 = scmp.lt.u32.totalorder %s2030_s4, %s2026_s28  ;;  %p2034_p13 = scmp.lt.u32.totalorder %s2026_s28, %s2820_s18 }
 0x280   : > { %p2028_p7 = pnand %p2027_p6, %p2162_p4 }
 0x281   : > { %p2033_p12 = por %p2032_p11, %p2031_p10 }
 0x282   : > { %p2029_p9 = pneg %p2028_p7 }
 0x283   : > { %p2035_p0 = por %p2034_p13, %p2033_p12 }
 0x285   : > { %p2036_p1 = pnand %p2035_p0, %p2029_p9 }
 0x287   : > { %2039 = shalt.err (!%p2036_p1)
}
 0x288   : > { %1909 = dma.vmem_to_hbm [thread:$0]  (%p2162_p4), %s2822_s9, 32, %s2820_s18, %s1646_s19  }
 0x289 PF: > { %p1915_p2 = scmp.ge.s32.totalorder %s2090_s17, 2  ;;  %s1688_s6 = sand.u32 1, %s2070_s12  }
 0x28a   : > { %s1689_s7 = scalar_lea.sflag [#allocation3], %s1688_s6 }
 0x28b   : > { %p1912_p3 = pnand %p1915_p2, %p2169_p8 }
 0x28d   : > { %2065 = dma.done.wait (!%p1912_p3), %s1689_s7, 32  }
 0x28e   : > { %2067 = vsyncadd (!%p1912_p3), %s1689_s7, 4294967264  ;;  %s17_s17 = sadd.s32 1, %s2090_s17   ;;  %s2876_s12 = smov %s2074_s13 }
 0x28f   : > { %p14_p5 = scmp.ge.s32.totalorder %s17_s17, 4   ;;  %s2877_s13 = smov %s2078_s14 }
 0x290   : > { %s2878_s14 = smov %s2175_s25  ;;  %s2879_s15 = smov %s2086_s16 }
 0x291   : > { %s2880_s16 = smov %s2882_s20  ;;  %16 = sbr.rel (!%p14_p5) target bundleno = 4 (0x4), region = 80 }
 0x298   :  { %1694 = vsyncpa [#allocation3], 1 }
 0x299   :  { %1696 = vsyncpa [#allocation3 + $0x1], 1 }

</bundles_post_ra>
